<compile_context>
chip_gen: v6e
topology: v6e:2x2x1
jax: 0.10.0
libtpu: 0.0.40
codegen_flags: <defaults>
</compile_context>

<pallas_src>
import functools

import jax
import jax.numpy as jnp
from jax.experimental import pallas as pl
from jax.experimental.pallas import tpu as pltpu

# Hidden sizes of the 10 linear layers (input_size / output_size set by caller).
HIDDEN = [64, 128, 256, 512, 256, 128, 64, 32, 16]
NUM_LAYERS = 10
LANE = 128


def _round_up(x, m):
    return ((x + m - 1) // m) * m


def mlp_kernel(x_ref, w_ref, b_ref, o_ref, *, padded_dims):
    """Whole 10-layer MLP on one (bm, 128) batch tile; packed weights stay in VMEM.

    x_ref : (bm, padded_dims[0])           compute dtype (bf16 or f32)
    w_ref : (sum(padded_dims[:-1]), max_n) compute dtype  -- packed weight slab
    b_ref : (16, max_n)                    f32            -- packed bias slab
    o_ref : (bm, padded_dims[-1])          f32            -- lane-dense output
    """
    compute_dtype = w_ref.dtype
    h = x_ref[...]                                   # (bm, padded_dims[0])
    row = 0
    for i in range(NUM_LAYERS):
        kp = padded_dims[i]
        npad = padded_dims[i + 1]
        # Static, 128-aligned slices of the resident slabs (no extra DMA).
        w = w_ref[row:row + kp, 0:npad]              # (kp, npad)
        b = b_ref[i:i + 1, 0:npad]                   # (1, npad) f32
        acc = jnp.dot(h, w, preferred_element_type=jnp.float32) + b
        if i < NUM_LAYERS - 1:                       # no ReLU after the last layer
            h = jnp.maximum(acc, 0.0).astype(compute_dtype)
        else:
            h = acc                                  # keep f32 for the final store
        row += kp
    o_ref[...] = h.astype(o_ref.dtype)


def temporal_classifier(x, weights, biases, *, bm=256, compute_dtype=jnp.bfloat16):
    """Run the MLP with a Pallas kernel, tiling over the batch dimension.

    x          : (..., input_size) f32 (any leading batch dims, like nn.Linear)
    weights[i] : (in_i, out_i) f32  (i.e. PyTorch W.T)
    biases[i]  : (out_i,) f32
    """
    lead_shape = x.shape[:-1]
    in_dim = x.shape[-1]
    x2 = x.reshape(-1, in_dim)
    B = x2.shape[0]

    out_dim = weights[-1].shape[1]
    dims = [in_dim] + [w.shape[1] for w in weights]
    assert len(dims) == NUM_LAYERS + 1
    padded = tuple(_round_up(d, LANE) for d in dims)

    # ---- pack all weights / biases into single lane-padded slabs (zero pad). ----
    total_k = sum(padded[:-1])
    max_n = max(padded[1:])
    w_slab = jnp.zeros((total_k, max_n), compute_dtype)
    b_slab = jnp.zeros((_round_up(NUM_LAYERS, 8), max_n), jnp.float32)
    row = 0
    for i, (w, b) in enumerate(zip(weights, biases)):
        k, n = w.shape
        w_slab = w_slab.at[row:row + k, :n].set(w.astype(compute_dtype))
        b_slab = b_slab.at[i, :n].set(b.reshape(-1).astype(jnp.float32))
        row += padded[i]

    # ---- pad batch / input features to tile boundaries. ----
    bm = max(8, _round_up(min(bm, _round_up(B, 8)), 8))
    B_pad = _round_up(B, bm)
    x_p = jnp.zeros((B_pad, padded[0]), compute_dtype)
    x_p = x_p.at[:B, :in_dim].set(x2.astype(compute_dtype))

    grid = (B_pad // bm,)

    # Advisory cost estimate for XLA scheduling.
    flops = 2 * B_pad * sum(padded[i] * padded[i + 1] for i in range(NUM_LAYERS))
    cw = jnp.dtype(compute_dtype).itemsize
    bytes_accessed = (x_p.size * cw + w_slab.size * cw + b_slab.size * 4
                      + B_pad * padded[-1] * 4)
    cost = pl.CostEstimate(flops=flops, transcendentals=0,
                           bytes_accessed=bytes_accessed)

    # Conservative VMEM budget (double-buffered tiles + resident slabs + live
    # f32 activations), capped at 60 MiB so it is valid on v7x (64 MiB physical).
    vmem_est = (2 * bm * padded[0] * cw
                + 2 * bm * padded[-1] * 4
                + 2 * w_slab.size * cw
                + 2 * b_slab.size * 4
                + 6 * bm * max_n * 4)
    vmem_limit = int(min(60 * 2**20, max(32 * 2**20, 2 * vmem_est)))

    out = pl.pallas_call(
        functools.partial(mlp_kernel, padded_dims=padded),
        out_shape=jax.ShapeDtypeStruct((B_pad, padded[-1]), jnp.float32),
        grid=grid,
        in_specs=[
            pl.BlockSpec((bm, padded[0]), lambda i: (i, 0)),
            # Constant index_maps: the slabs are DMA'd once and stay resident
            # across all batch tiles (~2 MB bf16; double-buffer waste is tiny).
            pl.BlockSpec(w_slab.shape, lambda i: (0, 0)),
            pl.BlockSpec(b_slab.shape, lambda i: (0, 0)),
        ],
        out_specs=pl.BlockSpec((bm, padded[-1]), lambda i: (i, 0)),
        compiler_params=pltpu.CompilerParams(
            dimension_semantics=("parallel",),      # batch tiles split across TCs (v7x)
            vmem_limit_bytes=vmem_limit),
        cost_estimate=cost,
    )(x_p, w_slab, b_slab)

    return out[:B, :out_dim].reshape(*lead_shape, out_dim)


def init_params(key, input_size, output_size):
    """Deterministic init mirroring nn.Linear's U(-1/sqrt(fan_in), 1/sqrt(fan_in))."""
    dims = [input_size] + HIDDEN + [output_size]
    weights, biases = [], []
    for i in range(NUM_LAYERS):
        fan_in, fan_out = dims[i], dims[i + 1]
        key, kw, kb = jax.random.split(key, 3)
        bound = 1.0 / jnp.sqrt(jnp.float32(fan_in))
        w = jax.random.uniform(kw, (fan_in, fan_out), jnp.float32, -bound, bound)
        b = jax.random.uniform(kb, (fan_out,), jnp.float32, -bound, bound)
        weights.append(w)
        biases.append(b)
    return weights, biases


def reference_forward(x, weights, biases):
    h = x
    for i in range(NUM_LAYERS):
        h = h @ weights[i] + biases[i]
        if i < NUM_LAYERS - 1:
            h = jnp.maximum(h, 0.0)
    return h


if __name__ == "__main__":
    input_size = 32
    output_size = 10
    batch = 96              # small demo; with bm=64 this gives 2 batch tiles + padding

    key = jax.random.PRNGKey(0)
    key, kx = jax.random.split(key)
    x = jax.random.normal(kx, (batch, input_size), jnp.float32)
    weights, biases = init_params(key, input_size, output_size)

    ref = reference_forward(x, weights, biases)

    # f32 path, multi-tile grid (bm=64 -> 2 tiles, last tile padded):
    # exact-semantics check vs the PyTorch-equivalent reference.
    out_f32 = jax.block_until_ready(
        temporal_classifier(x, weights, biases, bm=64, compute_dtype=jnp.float32))
    assert out_f32.shape == (batch, output_size)
    assert jnp.allclose(out_f32, ref, atol=1e-4, rtol=1e-4), "f32 mismatch vs reference"

    # bf16 path (default, MXU-native with f32 accumulation): looser tolerance.
    out_bf16 = jax.block_until_ready(
        temporal_classifier(x, weights, biases))
    assert out_bf16.shape == (batch, output_size)
    assert jnp.allclose(out_bf16, ref, atol=1e-1, rtol=1e-1), "bf16 mismatch vs reference"

    print("KERNEL_OK")
</pallas_src>

<mosaic_0001>
module attributes {stable_mosaic.version = 11 : i64} {
  func.func @mlp_kernel(%arg0: i32, %arg1: memref<64x128xf32, #tpu.memory_space<vmem>>, %arg2: memref<1920x512xf32, #tpu.memory_space<vmem>>, %arg3: memref<16x512xf32, #tpu.memory_space<vmem>>, %arg4: memref<64x128xf32, #tpu.memory_space<vmem>>) attributes {dimension_semantics = [#tpu.dimension_semantics<parallel>], iteration_bounds = array<i64: 2>, scalar_prefetch = 0 : i64, scratch_operands = 0 : i64, tpu.core_type = #tpu.core_type<tc>, window_params = [{transform_indices = @transform_0, window_bounds = array<i64: 64, 128>}, {pipeline_mode = #tpu.pipeline_mode<synchronous>, transform_indices = @transform_1, window_bounds = array<i64: 1920, 512>}, {pipeline_mode = #tpu.pipeline_mode<synchronous>, transform_indices = @transform_2, window_bounds = array<i64: 16, 512>}, {transform_indices = @transform_3, window_bounds = array<i64: 64, 128>}]} {
    %c0 = arith.constant 0 : index
    %c0_0 = arith.constant 0 : index
    %0 = vector.load %arg1[%c0, %c0_0] : memref<64x128xf32, #tpu.memory_space<vmem>>, vector<64x128xf32>
    %c0_1 = arith.constant 0 : index
    %c0_2 = arith.constant 0 : index
    %1 = vector.load %arg2[%c0_1, %c0_2] : memref<1920x512xf32, #tpu.memory_space<vmem>>, vector<128x128xf32>
    %c0_3 = arith.constant 0 : index
    %c0_4 = arith.constant 0 : index
    %2 = vector.load %arg3[%c0_3, %c0_4] : memref<16x512xf32, #tpu.memory_space<vmem>>, vector<1x128xf32>
    %cst = arith.constant dense<0.000000e+00> : vector<64x128xf32>
    %3 = tpu.matmul %0, %1, %cst {dimension_numbers = #tpu.dot_dimension_numbers<[1], [0], [0], [1], [0, 0, 1, 1], [], []>} : vector<64x128xf32>, vector<128x128xf32>, vector<64x128xf32> -> vector<64x128xf32>
    %4 = vector.broadcast %2 : vector<1x128xf32> to vector<64x128xf32>
    %5 = arith.addf %3, %4 : vector<64x128xf32>
    %cst_5 = arith.constant 0.000000e+00 : f32
    %6 = vector.broadcast %cst_5 : f32 to vector<64x128xf32>
    %7 = arith.maximumf %5, %6 : vector<64x128xf32>
    %c128 = arith.constant 128 : index
    %c0_6 = arith.constant 0 : index
    %8 = vector.load %arg2[%c128, %c0_6] : memref<1920x512xf32, #tpu.memory_space<vmem>>, vector<128x128xf32>
    %c1 = arith.constant 1 : index
    %c0_7 = arith.constant 0 : index
    %9 = vector.load %arg3[%c1, %c0_7] : memref<16x512xf32, #tpu.memory_space<vmem>>, vector<1x128xf32>
    %cst_8 = arith.constant dense<0.000000e+00> : vector<64x128xf32>
    %10 = tpu.matmul %7, %8, %cst_8 {dimension_numbers = #tpu.dot_dimension_numbers<[1], [0], [0], [1], [0, 0, 1, 1], [], []>} : vector<64x128xf32>, vector<128x128xf32>, vector<64x128xf32> -> vector<64x128xf32>
    %11 = vector.broadcast %9 : vector<1x128xf32> to vector<64x128xf32>
    %12 = arith.addf %10, %11 : vector<64x128xf32>
    %cst_9 = arith.constant 0.000000e+00 : f32
    %13 = vector.broadcast %cst_9 : f32 to vector<64x128xf32>
    %14 = arith.maximumf %12, %13 : vector<64x128xf32>
    %c256 = arith.constant 256 : index
    %c0_10 = arith.constant 0 : index
    %15 = vector.load %arg2[%c256, %c0_10] : memref<1920x512xf32, #tpu.memory_space<vmem>>, vector<128x256xf32>
    %c2 = arith.constant 2 : index
    %c0_11 = arith.constant 0 : index
    %16 = vector.load %arg3[%c2, %c0_11] : memref<16x512xf32, #tpu.memory_space<vmem>>, vector<1x256xf32>
    %cst_12 = arith.constant dense<0.000000e+00> : vector<64x256xf32>
    %17 = tpu.matmul %14, %15, %cst_12 {dimension_numbers = #tpu.dot_dimension_numbers<[1], [0], [0], [1], [0, 0, 1, 1], [], []>} : vector<64x128xf32>, vector<128x256xf32>, vector<64x256xf32> -> vector<64x256xf32>
    %18 = vector.broadcast %16 : vector<1x256xf32> to vector<64x256xf32>
    %19 = arith.addf %17, %18 : vector<64x256xf32>
    %cst_13 = arith.constant 0.000000e+00 : f32
    %20 = vector.broadcast %cst_13 : f32 to vector<64x256xf32>
    %21 = arith.maximumf %19, %20 : vector<64x256xf32>
    %c384 = arith.constant 384 : index
    %c0_14 = arith.constant 0 : index
    %22 = vector.load %arg2[%c384, %c0_14] : memref<1920x512xf32, #tpu.memory_space<vmem>>, vector<256x512xf32>
    %c3 = arith.constant 3 : index
    %c0_15 = arith.constant 0 : index
    %23 = vector.load %arg3[%c3, %c0_15] : memref<16x512xf32, #tpu.memory_space<vmem>>, vector<1x512xf32>
    %cst_16 = arith.constant dense<0.000000e+00> : vector<64x512xf32>
    %24 = tpu.matmul %21, %22, %cst_16 {dimension_numbers = #tpu.dot_dimension_numbers<[1], [0], [0], [1], [0, 0, 1, 1], [], []>} : vector<64x256xf32>, vector<256x512xf32>, vector<64x512xf32> -> vector<64x512xf32>
    %25 = vector.broadcast %23 : vector<1x512xf32> to vector<64x512xf32>
    %26 = arith.addf %24, %25 : vector<64x512xf32>
    %cst_17 = arith.constant 0.000000e+00 : f32
    %27 = vector.broadcast %cst_17 : f32 to vector<64x512xf32>
    %28 = arith.maximumf %26, %27 : vector<64x512xf32>
    %c640 = arith.constant 640 : index
    %c0_18 = arith.constant 0 : index
    %29 = vector.load %arg2[%c640, %c0_18] : memref<1920x512xf32, #tpu.memory_space<vmem>>, vector<512x256xf32>
    %c4 = arith.constant 4 : index
    %c0_19 = arith.constant 0 : index
    %30 = vector.load %arg3[%c4, %c0_19] : memref<16x512xf32, #tpu.memory_space<vmem>>, vector<1x256xf32>
    %cst_20 = arith.constant dense<0.000000e+00> : vector<64x256xf32>
    %31 = tpu.matmul %28, %29, %cst_20 {dimension_numbers = #tpu.dot_dimension_numbers<[1], [0], [0], [1], [0, 0, 1, 1], [], []>} : vector<64x512xf32>, vector<512x256xf32>, vector<64x256xf32> -> vector<64x256xf32>
    %32 = vector.broadcast %30 : vector<1x256xf32> to vector<64x256xf32>
    %33 = arith.addf %31, %32 : vector<64x256xf32>
    %cst_21 = arith.constant 0.000000e+00 : f32
    %34 = vector.broadcast %cst_21 : f32 to vector<64x256xf32>
    %35 = arith.maximumf %33, %34 : vector<64x256xf32>
    %c1152 = arith.constant 1152 : index
    %c0_22 = arith.constant 0 : index
    %36 = vector.load %arg2[%c1152, %c0_22] : memref<1920x512xf32, #tpu.memory_space<vmem>>, vector<256x128xf32>
    %c5 = arith.constant 5 : index
    %c0_23 = arith.constant 0 : index
    %37 = vector.load %arg3[%c5, %c0_23] : memref<16x512xf32, #tpu.memory_space<vmem>>, vector<1x128xf32>
    %cst_24 = arith.constant dense<0.000000e+00> : vector<64x128xf32>
    %38 = tpu.matmul %35, %36, %cst_24 {dimension_numbers = #tpu.dot_dimension_numbers<[1], [0], [0], [1], [0, 0, 1, 1], [], []>} : vector<64x256xf32>, vector<256x128xf32>, vector<64x128xf32> -> vector<64x128xf32>
    %39 = vector.broadcast %37 : vector<1x128xf32> to vector<64x128xf32>
    %40 = arith.addf %38, %39 : vector<64x128xf32>
    %cst_25 = arith.constant 0.000000e+00 : f32
    %41 = vector.broadcast %cst_25 : f32 to vector<64x128xf32>
    %42 = arith.maximumf %40, %41 : vector<64x128xf32>
    %c1408 = arith.constant 1408 : index
    %c0_26 = arith.constant 0 : index
    %43 = vector.load %arg2[%c1408, %c0_26] : memref<1920x512xf32, #tpu.memory_space<vmem>>, vector<128x128xf32>
    %c6 = arith.constant 6 : index
    %c0_27 = arith.constant 0 : index
    %44 = vector.load %arg3[%c6, %c0_27] : memref<16x512xf32, #tpu.memory_space<vmem>>, vector<1x128xf32>
    %cst_28 = arith.constant dense<0.000000e+00> : vector<64x128xf32>
    %45 = tpu.matmul %42, %43, %cst_28 {dimension_numbers = #tpu.dot_dimension_numbers<[1], [0], [0], [1], [0, 0, 1, 1], [], []>} : vector<64x128xf32>, vector<128x128xf32>, vector<64x128xf32> -> vector<64x128xf32>
    %46 = vector.broadcast %44 : vector<1x128xf32> to vector<64x128xf32>
    %47 = arith.addf %45, %46 : vector<64x128xf32>
    %cst_29 = arith.constant 0.000000e+00 : f32
    %48 = vector.broadcast %cst_29 : f32 to vector<64x128xf32>
    %49 = arith.maximumf %47, %48 : vector<64x128xf32>
    %c1536 = arith.constant 1536 : index
    %c0_30 = arith.constant 0 : index
    %50 = vector.load %arg2[%c1536, %c0_30] : memref<1920x512xf32, #tpu.memory_space<vmem>>, vector<128x128xf32>
    %c7 = arith.constant 7 : index
    %c0_31 = arith.constant 0 : index
    %51 = vector.load %arg3[%c7, %c0_31] : memref<16x512xf32, #tpu.memory_space<vmem>>, vector<1x128xf32>
    %cst_32 = arith.constant dense<0.000000e+00> : vector<64x128xf32>
    %52 = tpu.matmul %49, %50, %cst_32 {dimension_numbers = #tpu.dot_dimension_numbers<[1], [0], [0], [1], [0, 0, 1, 1], [], []>} : vector<64x128xf32>, vector<128x128xf32>, vector<64x128xf32> -> vector<64x128xf32>
    %53 = vector.broadcast %51 : vector<1x128xf32> to vector<64x128xf32>
    %54 = arith.addf %52, %53 : vector<64x128xf32>
    %cst_33 = arith.constant 0.000000e+00 : f32
    %55 = vector.broadcast %cst_33 : f32 to vector<64x128xf32>
    %56 = arith.maximumf %54, %55 : vector<64x128xf32>
    %c1664 = arith.constant 1664 : index
    %c0_34 = arith.constant 0 : index
    %57 = vector.load %arg2[%c1664, %c0_34] : memref<1920x512xf32, #tpu.memory_space<vmem>>, vector<128x128xf32>
    %c8 = arith.constant 8 : index
    %c0_35 = arith.constant 0 : index
    %58 = vector.load %arg3[%c8, %c0_35] : memref<16x512xf32, #tpu.memory_space<vmem>>, vector<1x128xf32>
    %cst_36 = arith.constant dense<0.000000e+00> : vector<64x128xf32>
    %59 = tpu.matmul %56, %57, %cst_36 {dimension_numbers = #tpu.dot_dimension_numbers<[1], [0], [0], [1], [0, 0, 1, 1], [], []>} : vector<64x128xf32>, vector<128x128xf32>, vector<64x128xf32> -> vector<64x128xf32>
    %60 = vector.broadcast %58 : vector<1x128xf32> to vector<64x128xf32>
    %61 = arith.addf %59, %60 : vector<64x128xf32>
    %cst_37 = arith.constant 0.000000e+00 : f32
    %62 = vector.broadcast %cst_37 : f32 to vector<64x128xf32>
    %63 = arith.maximumf %61, %62 : vector<64x128xf32>
    %c1792 = arith.constant 1792 : index
    %c0_38 = arith.constant 0 : index
    %64 = vector.load %arg2[%c1792, %c0_38] : memref<1920x512xf32, #tpu.memory_space<vmem>>, vector<128x128xf32>
    %c9 = arith.constant 9 : index
    %c0_39 = arith.constant 0 : index
    %65 = vector.load %arg3[%c9, %c0_39] : memref<16x512xf32, #tpu.memory_space<vmem>>, vector<1x128xf32>
    %cst_40 = arith.constant dense<0.000000e+00> : vector<64x128xf32>
    %66 = tpu.matmul %63, %64, %cst_40 {dimension_numbers = #tpu.dot_dimension_numbers<[1], [0], [0], [1], [0, 0, 1, 1], [], []>} : vector<64x128xf32>, vector<128x128xf32>, vector<64x128xf32> -> vector<64x128xf32>
    %67 = vector.broadcast %65 : vector<1x128xf32> to vector<64x128xf32>
    %68 = arith.addf %66, %67 : vector<64x128xf32>
    %c0_41 = arith.constant 0 : index
    %c0_42 = arith.constant 0 : index
    %69 = vector.load %arg4[%c0_41, %c0_42] : memref<64x128xf32, #tpu.memory_space<vmem>>, vector<64x128xf32>
    tpu.vector_store %arg4[%c0_41, %c0_42], %68 {strides = array<i32>} : memref<64x128xf32, #tpu.memory_space<vmem>>, vector<64x128xf32>,
    return
  }
  func.func @transform_0(%arg0: i32) -> (i32, i32) {
    %c0_i32 = arith.constant 0 : i32
    %c0_i32_0 = arith.constant 0 : i32
    return %arg0, %c0_i32 : i32, i32
  }
  func.func @transform_1(%arg0: i32) -> (i32, i32) {
    %c0_i32 = arith.constant 0 : i32
    %c0_i32_0 = arith.constant 0 : i32
    %c0_i32_1 = arith.constant 0 : i32
    return %c0_i32, %c0_i32_0 : i32, i32
  }
  func.func @transform_2(%arg0: i32) -> (i32, i32) {
    %c0_i32 = arith.constant 0 : i32
    %c0_i32_0 = arith.constant 0 : i32
    %c0_i32_1 = arith.constant 0 : i32
    return %c0_i32, %c0_i32_0 : i32, i32
  }
  func.func @transform_3(%arg0: i32) -> (i32, i32) {
    %c0_i32 = arith.constant 0 : i32
    %c0_i32_0 = arith.constant 0 : i32
    return %arg0, %c0_i32 : i32, i32
  }
}

</mosaic_0001>

<bundles_post_ra>
// kernel: tpu_custom_call.1
= control target key start
LH: loop header
LB: loop body
LE: loop exit
PB: predicated region body
PF: predicated region fallthrough
CT: control target
= control target key end

     0   :  { %8 = vsyncpa [#allocation3], 0  ;;  %s3281_s0 = inlined_call_operand.hbm [shape: f32[128,128], index: 0, kind: input, shape index: {}]   ;;  %s3282_s1 = inlined_call_operand.hbm [shape: f32[1920,512], index: 1, kind: input, shape index: {}]   ;;  %s3283_s2 = inlined_call_operand.hbm [shape: f32[16,512], index: 2, kind: input, shape index: {}]   ;;  %s3284_s3 = inlined_call_operand.hbm [shape: f32[128,128], index: 3, kind: output, shape index: {}]  }
   0x1   :  { %10 = vsyncpa [#allocation3 + $0x1], 0 }
   0x2   :  { %11 = vsyncpa [#allocation6], 0 }
   0x3   :  { %12 = vsyncpa [#allocation4], 0 }
   0x4   :  { %14 = vsyncpa [#allocation4 + $0x1], 0  ;;  %s2965_s12 = smov 0   ;;  %s2967_s13 = smov 0  }
   0x5   :  { %s2969_s14 = smov 0   ;;  %s2971_s15 = smov 0  }
   0x6 LB: > { %s2986_s16 = sadd.s32 4294967295, %s2932_s15   ;;  %s2226_s17 = sadd.s32 4294967294, %s2932_s15   ;;  %s2932_s15 = sphi %s2971_s15, %s3306_s15   ;;  %s2928_s14 = sphi %s2969_s14, %s3305_s14   ;;  %s2924_s13 = sphi %s2967_s13, %s3304_s13   ;;  %s2920_s12 = sphi %s2965_s12, %s3303_s12  }
   0x7   : > { %p40_p0 = scmp.ne.s32.totalorder %s2924_s13, %s2920_s12  ;;  %p3285_p1 = scmp.eq.s32.totalorder %s2986_s16, 0 }
   0x8   : > { %p112_p3 = scmp.eq.s32.totalorder %s2226_s17, 1  ;;  %p2227_p5 = scmp.ge.s32.totalorder %s2932_s15, 1 }
   0x9   : > { %p2995_p4 = por %p3285_p1, %p40_p0  ;;  %p119_p7 = scmp.lt.s32.totalorder %s2932_s15, 3 }
   0xa   : > { %p3000_p6 = por %p112_p3, %p40_p0  ;;  %s2934_s21 = smov [#allocation5]  }
   0xb   : > { %s3289_s18 = scalar_select %p2995_p4, 1, 0 }
   0xc   : > { %s3290_s19 = scalar_select %p3000_p6, 1, 0 }
   0xd   : > { %p3005_p8 = pnand %p2227_p5, %p119_p7  ;;  %s131_s22 = sshll.u32 %s2934_s21, 4  ;;  %s132_s22 = int_to_ptr.vmem [resolvable:$true] %s131_s22 }
   0xe   : > { %s2935_s24 = smov [#allocation7]   ;;  %s2795_s26 = scalar_lea.vmem %s132_s22, 122880 }
   0xf   : > { %s3291_s20 = scalar_select %p3005_p8, 1, 0 }
  0x10   : > { %p2722_p9 = pneg %p3005_p8  ;;  %s144_s25 = sshll.u32 %s2935_s24, 4  ;;  %s145_s25 = int_to_ptr.vmem [resolvable:$true] %s144_s25 }
  0x11   : > { %p2796_p13 = scmp.ne.s32.totalorder %s132_s22, %s2795_s26  ;;  %p2803_p5 = scmp.lt.s32.totalorder %s132_s22, %s132_s22 }
  0x12   : > { %p3014_p11 = pnand %p2722_p9, %p3285_p1  ;;  %p2804_p7 = scmp.lt.s32.totalorder %s2795_s26, %s2795_s26 }
  0x14   : > { %p2786_p12 = pneg %p3014_p11  ;;  %p2805_p10 = por %p2804_p7, %p2803_p5 }
  0x16   : > { %p2798_p0 = pnand %p2796_p13, %p2786_p12 }
  0x18   : > { %p2799_p3 = pneg %p2798_p0 }
  0x1a   : > { %p2806_p9 = pnand %p2805_p10, %p2799_p3 }
  0x1c   : > { %2809 = shalt.err (!%p2806_p9)
}
  0x1d   : > { %s2936_s27 = smov 512   ;;  %s2937_s28 = smov 32  }
  0x1e   : > { %2725 = dma.hbm_to_vmem [thread:$0]  (!%p3014_p11), %s3282_s1, 122880, %s132_s22, [#allocation6], %s2936_s27, %s2936_s27, %s2937_s28  }
  0x1f   : > { %s2821_s4 = scalar_lea.vmem %s145_s25, 1024  ;;  %p2829_p2 = scmp.lt.s32.totalorder %s145_s25, %s145_s25 }
  0x20   : > { %p2822_p1 = scmp.ne.s32.totalorder %s145_s25, %s2821_s4  ;;  %p2830_p6 = scmp.lt.s32.totalorder %s2821_s4, %s2821_s4 }
  0x22   : > { %p2824_p13 = pnand %p2822_p1, %p2786_p12  ;;  %p2831_p5 = por %p2830_p6, %p2829_p2 }
  0x24   : > { %p2825_p0 = pneg %p2824_p13 }
  0x26   : > { %p2832_p10 = pnand %p2831_p5, %p2825_p0 }
  0x28   : > { %2835 = shalt.err (!%p2832_p10)
}
  0x29   : > { %2728 = dma.hbm_to_vmem [thread:$0]  (!%p3014_p11), %s3283_s2, 1024, %s145_s25, [#allocation6], %s2936_s27, %s2936_s27, %s2937_s28  }
  0x2a   : > { %s3037_s7 = sadd.s32 1, %s2932_s15   ;;  %s27_s8 = sadd.s32 1, %s2928_s14 }
  0x2b   : > { %s24_s9 = ssub.s32 %s2932_s15, %s3037_s7  ;;  %p34_p1 = scmp.ne.s32.totalorder %s2928_s14, %s2924_s13 }
  0x2c   : > { %p25_p2 = scmp.eq.s32.totalorder %s24_s9, 0  ;;  %p35_p6 = scmp.eq.s32.totalorder %s2932_s15, 0 }
  0x2d   : > { %p3293_p12 = scmp.eq.s32.totalorder %s2986_s16, 1  ;;  %p2739_p7 = scmp.lt.s32.totalorder %s2932_s15, 2 }
  0x2e   : > { %s3053_s11 = scalar_select %p25_p2, %s2928_s14, %s27_s8  }
  0x2f   : > { %p3047_p3 = por %p3293_p12, %p34_p1  ;;  %p36_p9 = por %p35_p6, %p34_p1 }
  0x30   : > { %s158_s17 = sand.u32 1, %s2928_s14   ;;  %s2244_s22 = sshll.u32 %s2932_s15, 10 }
  0x31   : > { %s3294_s10 = scalar_select %p3047_p3, 1, 0 }
  0x32   : > { %s2231_s21 = sshll.u32 %s158_s17, 6  ;;  %s3060_s25 = scalar_lea.hbm %s3281_s0, %s2244_s22 }
  0x33   : > { %s162_s26 = scalar_lea.vmem [#allocation2], %s2231_s21  ;;  %p3064_p11 = pnand %p2739_p7, %p36_p9 }
  0x34   : > { %s169_s27 = sshll.u32 %s162_s26, 4  ;;  %s3068_s29 = scalar_lea.sflag [#allocation3], %s158_s17  ;;  %s3062_s27 = int_to_ptr.vmem [resolvable:$true] %s169_s27 }
  0x35   : > { %s2836_s30 = scalar_lea.hbm %s3060_s25, 1024  ;;  %p2838_p0 = pneg %p3064_p11 }
  0x36   : > { %p2837_p13 = scmp.ne.s32.totalorder %s3060_s25, %s2836_s30  ;;  %s2841_s6 = scalar_lea.hbm %s3281_s0, 2048 }
  0x37   : > { %p2842_p1 = scmp.lt.s32.totalorder %s3060_s25, %s3281_s0  ;;  %p2843_p2 = scmp.lt.s32.totalorder %s2841_s6, %s2836_s30 }
  0x38   : > { %p2839_p5 = pnand %p2838_p0, %p2837_p13 }
  0x39   : > { %p2844_p6 = por %p2843_p2, %p2842_p1 }
  0x3a   : > { %p2840_p10 = pneg %p2839_p5 }
  0x3c   : > { %p2845_p12 = pnand %p2844_p6, %p2840_p10 }
  0x3e   : > { %2848 = shalt.err (!%p2845_p12)
}
  0x3f   : > { %s2849_s17 = scalar_lea.vmem %s3062_s27, 1024  ;;  %s2938_s21 = smov [#allocation2]  }
  0x40   : > { %p2850_p7 = scmp.ne.s32.totalorder %s3062_s27, %s2849_s17  ;;  %s2854_s22 = sshll.u32 %s2938_s21, 4  ;;  %s2855_s22 = int_to_ptr.vmem [resolvable:$false] %s2854_s22 }
  0x41   : > { %s2856_s23 = scalar_lea.vmem %s2855_s22, 2048  ;;  %p2857_p5 = scmp.lt.s32.totalorder %s3062_s27, %s2855_s22 }
  0x42   : > { %p2852_p9 = pnand %p2850_p7, %p2838_p0  ;;  %p2858_p3 = scmp.lt.s32.totalorder %s2856_s23, %s2849_s17 }
  0x44   : > { %p2853_p13 = pneg %p2852_p9  ;;  %p2859_p4 = por %p2858_p3, %p2857_p5 }
  0x46   : > { %p2860_p8 = pnand %p2859_p4, %p2853_p13 }
  0x48   : > { %2863 = shalt.err (!%p2860_p8)
}
  0x49   : > { %s2939_s24 = smov 128   ;;  %s2940_s26 = smov 8  }
  0x4a   : > { %2732 = dma.hbm_to_vmem [thread:$0]  (!%p3064_p11), %s3060_s25, 1024, %s3062_s27, %s3068_s29, %s2939_s24, %s2939_s24, %s2940_s26  }
  0x4b   : > { %p3296_p0 = scmp.ne.s32.totalorder %s3291_s20, 0 }
  0x4c   : > { %s3092_s30 = sand.u32 (!%p3296_p0), 1, %s2924_s13   ;;  %p3297_p4 = scmp.ne.s32.totalorder (!%p3296_p0), %s3289_s18, 0 }
  0x4d   : > { %181 = sbr.rel (%p3296_p0) target bundleno = 2160 (0x870), region = 32  ;;  %s2235_s4 = sshll.u32 (!%p3296_p0), %s3092_s30, 6 }
  0x4e   : > { %s184_s5 = scalar_lea.sflag (!%p3296_p0), [#allocation3], %s3092_s30  ;;  %s3098_s6 = scalar_lea.vmem (!%p3296_p0), [#allocation2], %s2235_s4 }
  0x52   : > { %2907 = dma.done.wait (%p3297_p4), %s184_s5, 1024  }
  0x53   : > { %2909 = vsyncadd (%p3297_p4), %s184_s5, 4294966272  ;;  %p3298_p8 = scmp.eq.s32.totalorder %s2986_s16, 0 }
  0x55   : > { %2911 = dma.done.wait (%p3298_p8), [#allocation6], 123904   ;;  %p3299_p3 = pmov %p3298_p8 }
  0x56   : > { %v243_v0 = vld [vmem:[#allocation5 + $0x1e0] sm:$0xff]  ;;  %v221_v29 = vld [vmem:[%s3098_s6 + $0x8] sm:$0xff]  ;;  %v222_v30 = vld [vmem:[%s3098_s6 + $0x10] sm:$0xff]  ;;  %s217_s18 = scalar_lea.vmem [#allocation8], %s2235_s4  ;;  %s2245_s25 = sshll.u32 %s2986_s16, 10 }
  0x57   : > { %2913 = vsyncadd (%p3299_p3), [#allocation6], 4294843392  ;;  %v242_v1 = vld [vmem:[#allocation5 + $0x1c0] sm:$0xff]  ;;  %2446 = vmatprep.subr.mxu0 %v243_v0  ;;  %v223_v31 = vld [vmem:[%s3098_s6 + $0x18] sm:$0xff]  ;;  %s2134_s20 = sshll.u32 %s217_s18, 4  ;;  %s3238_s29 = scalar_lea.hbm %s3284_s3, %s2245_s25  ;;  %s3233_s20 = int_to_ptr.vmem [resolvable:$true] %s2134_s20 }
  0x58   : > { %2447 = vmatpush3.msra.mxu0 %v243_v0  ;;  %v241_v2 = vld [vmem:[#allocation5 + $0x1a0] sm:$0xff]  ;;  %v225_v33 = vld [vmem:[%s3098_s6 + $0x28] sm:$0xff]  ;;  %v226_v34 = vld [vmem:[%s3098_s6 + $0x30] sm:$0xff]  ;;  %s2121_s8 = scalar_lea.sflag [#allocation4], %s3092_s30  ;;  %s2864_s9 = scalar_lea.vmem %s3233_s20, 1024 }
  0x59   : > { %2448 = vmatprep.subr.mxu0 %v242_v1  ;;  %v240_v3 = vld [vmem:[#allocation5 + $0x180] sm:$0xff]  ;;  %v227_v35 = vld [vmem:[%s3098_s6 + $0x38] sm:$0xff]  ;;  %v519_v40 = vld [vmem:[#allocation5 + $0x5e8] sm:$0xff]  ;;  %p2865_p11 = scmp.ne.s32.totalorder %s3233_s20, %s2864_s9  ;;  %p3300_p10 = scmp.ne.s32.totalorder %s3294_s10, 0 }
  0x5a   : > { %2449 = vmatpush3.msra.mxu0 %v242_v1  ;;  %v220_v4 = vld [vmem:[%s3098_s6] sm:$0xff]  ;;  %v517_v42 = vld [vmem:[#allocation5 + $0x5c8] sm:$0xff]  ;;  %s2942_s16 = smov [#allocation8]  }
  0x5b   : > { %2450 = vmatprep.subr.mxu0 %v241_v2  ;;  %v239_v5 = vld [vmem:[#allocation5 + $0x160] sm:$0xff]  ;;  %2478 = vmatprep.mubr.f32.mxu0 %v220_v4  ;;  %v515_v44 = vld [vmem:[#allocation5 + $0x5a8] sm:$0xff]  ;;  %p2866_p1 = pnand %p2865_p11, %p3300_p10  ;;  %s2868_s17 = sshll.u32 %s2942_s16, 4  ;;  %s2869_s17 = int_to_ptr.vmem [resolvable:$false] %s2868_s17 }
  0x5c   : > { %2451 = vmatpush3.msra.mxu0 %v241_v2  ;;  %v238_v6 = vld [vmem:[#allocation5 + $0x140] sm:$0xff]  ;;  %v513_v46 = vld [vmem:[#allocation5 + $0x588] sm:$0xff]  ;;  %s2870_s21 = scalar_lea.vmem %s2869_s17, 2048  ;;  %p2871_p6 = scmp.lt.s32.totalorder %s3233_s20, %s2869_s17 }
  0x5d   : > { %2452 = vmatprep.subr.mxu0 %v240_v3  ;;  %v373_v7 = vld [vmem:[#allocation5 + $0x3e0] sm:$0xff]  ;;  %v511_v48 = vld [vmem:[#allocation5 + $0x568] sm:$0xff]  ;;  %p2867_p2 = pneg %p2866_p1  ;;  %p2872_p12 = scmp.lt.s32.totalorder %s2870_s21, %s2864_s9 }
  0x5e   : > { %2453 = vmatpush3.msra.mxu0 %v240_v3  ;;  %v372_v8 = vld [vmem:[#allocation5 + $0x3c0] sm:$0xff]  ;;  %2490 = vmatprep.subr.mxu1 %v373_v7  ;;  %v509_v50 = vld [vmem:[#allocation5 + $0x548] sm:$0xff] }
  0x5f   : > { %2454 = vmatprep.subr.mxu0 %v239_v5  ;;  %v237_v9 = vld [vmem:[#allocation5 + $0x120] sm:$0xff]  ;;  %2491 = vmatpush3.msra.mxu1 %v373_v7  ;;  %v507_v52 = vld [vmem:[#allocation5 + $0x528] sm:$0xff]  ;;  %p2873_p7 = por %p2872_p12, %p2871_p6 }
  0x60   : > { %2455 = vmatpush3.msra.mxu0 %v239_v5  ;;  %v371_v10 = vld [vmem:[#allocation5 + $0x3a0] sm:$0xff]  ;;  %2492 = vmatprep.subr.mxu1 %v372_v8  ;;  %v505_v54 = vld [vmem:[#allocation5 + $0x508] sm:$0xff] }
  0x61   : > { %2456 = vmatprep.subr.mxu0 %v238_v6  ;;  %v236_v11 = vld [vmem:[#allocation5 + $0x100] sm:$0xff]  ;;  %2493 = vmatpush3.msra.mxu1 %v372_v8  ;;  %v503_v56 = vld [vmem:[#allocation5 + $0x4e8] sm:$0xff]  ;;  %p2874_p9 = pnand %p2873_p7, %p2867_p2 }
  0x62   : > { %2457 = vmatpush3.msra.mxu0 %v238_v6  ;;  %v370_v12 = vld [vmem:[#allocation5 + $0x380] sm:$0xff]  ;;  %2494 = vmatprep.subr.mxu1 %v371_v10  ;;  %v501_v58 = vld [vmem:[#allocation5 + $0x4c8] sm:$0xff] }
  0x63   : > { %2458 = vmatprep.subr.mxu0 %v237_v9  ;;  %v235_v13 = vld [vmem:[#allocation5 + $0xe0] sm:$0xff]  ;;  %2495 = vmatpush3.msra.mxu1 %v371_v10  ;;  %v499_v60 = vld [vmem:[#allocation5 + $0x4a8] sm:$0xff] }
  0x64   : > { %2459 = vmatpush3.msra.mxu0 %v237_v9  ;;  %v369_v14 = vld [vmem:[#allocation5 + $0x360] sm:$0xff]  ;;  %2496 = vmatprep.subr.mxu1 %v370_v12  ;;  %v497_v62 = vld [vmem:[#allocation5 + $0x488] sm:$0xff] }
  0x65   : > { %2460 = vmatprep.subr.mxu0 %v236_v11  ;;  %v234_v15 = vld [vmem:[#allocation5 + $0xc0] sm:$0xff]  ;;  %2497 = vmatpush3.msra.mxu1 %v370_v12  ;;  %v495_v0 = vld [vmem:[#allocation5 + $0x468] sm:$0xff] }
  0x66   : > { %2461 = vmatpush3.msra.mxu0 %v236_v11  ;;  %v368_v16 = vld [vmem:[#allocation5 + $0x340] sm:$0xff]  ;;  %2498 = vmatprep.subr.mxu1 %v369_v14 }
  0x67   : > { %2462 = vmatprep.subr.mxu0 %v235_v13  ;;  %v233_v17 = vld [vmem:[#allocation5 + $0xa0] sm:$0xff]  ;;  %2499 = vmatpush3.msra.mxu1 %v369_v14 }
  0x68   : > { %2463 = vmatpush3.msra.mxu0 %v235_v13  ;;  %v367_v18 = vld [vmem:[#allocation5 + $0x320] sm:$0xff]  ;;  %2500 = vmatprep.subr.mxu1 %v368_v16 }
  0x69   : > { %2464 = vmatprep.subr.mxu0 %v234_v15  ;;  %v232_v19 = vld [vmem:[#allocation5 + $0x80] sm:$0xff]  ;;  %2501 = vmatpush3.msra.mxu1 %v368_v16 }
  0x6a   : > { %2465 = vmatpush3.msra.mxu0 %v234_v15  ;;  %v366_v20 = vld [vmem:[#allocation5 + $0x300] sm:$0xff]  ;;  %2502 = vmatprep.subr.mxu1 %v367_v18 }
  0x6b   : > { %2466 = vmatprep.subr.mxu0 %v233_v17  ;;  %v231_v21 = vld [vmem:[#allocation5 + $0x60] sm:$0xff]  ;;  %2503 = vmatpush3.msra.mxu1 %v367_v18 }
  0x6c   : > { %2467 = vmatpush3.msra.mxu0 %v233_v17  ;;  %v365_v22 = vld [vmem:[#allocation5 + $0x2e0] sm:$0xff]  ;;  %2504 = vmatprep.subr.mxu1 %v366_v20 }
  0x6d   : > { %2468 = vmatprep.subr.mxu0 %v232_v19  ;;  %v230_v23 = vld [vmem:[#allocation5 + $0x40] sm:$0xff]  ;;  %2505 = vmatpush3.msra.mxu1 %v366_v20 }
  0x6e   : > { %2469 = vmatpush3.msra.mxu0 %v232_v19  ;;  %v364_v24 = vld [vmem:[#allocation5 + $0x2c0] sm:$0xff]  ;;  %2506 = vmatprep.subr.mxu1 %v365_v22 }
  0x6f   : > { %2470 = vmatprep.subr.mxu0 %v231_v21  ;;  %v229_v25 = vld [vmem:[#allocation5 + $0x20] sm:$0xff]  ;;  %2507 = vmatpush3.msra.mxu1 %v365_v22 }
  0x70   : > { %2471 = vmatpush3.msra.mxu0 %v231_v21  ;;  %v363_v26 = vld [vmem:[#allocation5 + $0x2a0] sm:$0xff]  ;;  %2508 = vmatprep.subr.mxu1 %v364_v24 }
  0x71   : > { %2472 = vmatprep.subr.mxu0 %v230_v23  ;;  %v228_v27 = vld [vmem:[#allocation5] sm:$0xff]  ;;  %2509 = vmatpush3.msra.mxu1 %v364_v24 }
  0x72   : > { %2473 = vmatpush3.msra.mxu0 %v230_v23  ;;  %v362_v28 = vld [vmem:[#allocation5 + $0x280] sm:$0xff]  ;;  %2510 = vmatprep.subr.mxu1 %v363_v26 }
  0x73   : > { %2474 = vmatprep.subr.mxu0 %v229_v25  ;;  %2511 = vmatpush3.msra.mxu1 %v363_v26  ;;  %v224_v32 = vld [vmem:[%s3098_s6 + $0x20] sm:$0xff] }
  0x74   : > { %2475 = vmatpush3.msra.mxu0 %v229_v25  ;;  %2512 = vmatprep.subr.mxu1 %v362_v28  ;;  %v361_v36 = vld [vmem:[#allocation5 + $0x260] sm:$0xff] }
  0x75   : > { %2476 = vmatprep.subr.mxu0 %v228_v27  ;;  %2513 = vmatpush3.msra.mxu1 %v362_v28  ;;  %v360_v37 = vld [vmem:[#allocation5 + $0x240] sm:$0xff] }
  0x76   : > { %2477 = vmatpush3.msra.mxu0 %v228_v27  ;;  %2514 = vmatprep.subr.mxu1 %v361_v36  ;;  %v359_v38 = vld [vmem:[#allocation5 + $0x220] sm:$0xff]  ;;  %v493_v27 = vld [vmem:[#allocation5 + $0x448] sm:$0xff] }
  0x77   : > { %2479 = vmatmul.mubr.f32.vlgmr.msra.gmra.mxu0 %v221_v29  ;;  %2515 = vmatpush3.msra.mxu1 %v361_v36  ;;  %v358_v39 = vld [vmem:[#allocation5 + $0x200] sm:$0xff]  ;;  %v491_v29 = vld [vmem:[#allocation5 + $0x428] sm:$0xff] }
  0x78   : > { %2481 = vmatprep.mubr.f32.mxu0 %v222_v30  ;;  %2516 = vmatprep.subr.mxu1 %v360_v37  ;;  %v518_v41 = vld [vmem:[#allocation5 + $0x5e0] sm:$0xff] }
  0x79   : > { %2517 = vmatpush3.msra.mxu1 %v360_v37  ;;  %533 = vmatprep.subr.mxu0 %v519_v40  ;;  %v516_v43 = vld [vmem:[#allocation5 + $0x5c0] sm:$0xff]  ;;  %v719_v37 = vld [vmem:[#allocation5 + $0x7c8] sm:$0xff] }
  0x7a   : > { %2518 = vmatprep.subr.mxu1 %v359_v38  ;;  %534 = vmatpush1.msra.mxu0 %v518_v41  ;;  %v514_v45 = vld [vmem:[#allocation5 + $0x5a0] sm:$0xff]  ;;  %v711_v41 = vld [vmem:[#allocation5 + $0x788] sm:$0xff] }
  0x7b   : > { %2482 = vmatmul.mubr.f32.gmra.mxu0 %v223_v31  ;;  %2519 = vmatpush3.msra.mxu1 %v359_v38  ;;  %v512_v47 = vld [vmem:[#allocation5 + $0x580] sm:$0xff]  ;;  %v489_v31 = vld [vmem:[#allocation5 + $0x408] sm:$0xff] }
  0x7c   : > { %2484 = vmatprep.mubr.f32.mxu0 %v224_v32  ;;  %2520 = vmatprep.subr.mxu1 %v358_v39  ;;  %v510_v49 = vld [vmem:[#allocation5 + $0x560] sm:$0xff] }
  0x7d   : > { %2521 = vmatpush3.msra.mxu1 %v358_v39  ;;  %535 = vmatprep.subr.mxu0 %v517_v42  ;;  %v508_v51 = vld [vmem:[#allocation5 + $0x540] sm:$0xff]  ;;  %v715_v39 = vld [vmem:[#allocation5 + $0x7a8] sm:$0xff] }
  0x7e   : > { %536 = vmatpush1.msra.mxu0 %v516_v43  ;;  %v506_v53 = vld [vmem:[#allocation5 + $0x520] sm:$0xff]  ;;  %v707_v43 = vld [vmem:[#allocation5 + $0x768] sm:$0xff] }
  0x7f   : > { %2485 = vmatmul.mubr.f32.gmra.mxu0 %v225_v33  ;;  %537 = vmatprep.subr.mxu0 %v515_v44  ;;  %v504_v55 = vld [vmem:[#allocation5 + $0x500] sm:$0xff]  ;;  %v2941_v33 = vmov 0.0  }
  0x80   : > { %2487 = vmatprep.mubr.f32.mxu0 %v226_v34  ;;  %538 = vmatpush1.msra.mxu0 %v514_v45  ;;  %v502_v57 = vld [vmem:[#allocation5 + $0x4e0] sm:$0xff]  ;;  %v723_v34 = vld [vmem:[#allocation5 + $0x7e8] sm:$0xff] }
  0x81   : > { %539 = vmatprep.subr.mxu0 %v513_v46  ;;  %v500_v59 = vld [vmem:[#allocation5 + $0x4c0] sm:$0xff]  ;;  %813 = vmatprep.subr.mxu1 %v723_v34  ;;  %v703_v45 = vld [vmem:[#allocation5 + $0x748] sm:$0xff] }
  0x82   : > { %540 = vmatpush1.msra.mxu0 %v512_v47  ;;  %v498_v61 = vld [vmem:[#allocation5 + $0x4a0] sm:$0xff]  ;;  %v699_v47 = vld [vmem:[#allocation5 + $0x728] sm:$0xff] }
  0x83   : > { %2488 = vmatmul.mubr.f32.gmra.mxu0 %v227_v35  ;;  %541 = vmatprep.subr.mxu0 %v511_v48  ;;  %v496_v63 = vld [vmem:[#allocation5 + $0x480] sm:$0xff]  ;;  %v725_v35 = vld [vmem:[#allocation5 + $0x7f8] sm:$0xff] }
  0x84   : > { %542 = vmatpush1.msra.mxu0 %v510_v49  ;;  %v244_v1 = vld [vmem:[#allocation7] ss:$0 sm:$0xff]  ;;  %597 = vmatprep.mubr.f32.mxu0 %v2941_v33  ;;  %v695_v49 = vld [vmem:[#allocation5 + $0x708] sm:$0xff] }
  0x85   : > { %543 = vmatprep.subr.mxu0 %v509_v50  ;;  %v494_v26 = vld [vmem:[#allocation5 + $0x460] sm:$0xff] }
  0x86   : > { %544 = vmatpush1.msra.mxu0 %v508_v51  ;;  %v492_v28 = vld [vmem:[#allocation5 + $0x440] sm:$0xff]  ;;  %v691_v51 = vld [vmem:[#allocation5 + $0x6e8] sm:$0xff] }
  0x87   : > { %545 = vmatprep.subr.mxu0 %v507_v52  ;;  %v490_v30 = vld [vmem:[#allocation5 + $0x420] sm:$0xff] }
  0x88   : > { %546 = vmatpush1.msra.mxu0 %v506_v53  ;;  %v488_v32 = vld [vmem:[#allocation5 + $0x400] sm:$0xff]  ;;  %v687_v53 = vld [vmem:[#allocation5 + $0x6c8] sm:$0xff] }
  0x89   : > { %547 = vmatprep.subr.mxu0 %v505_v54  ;;  %v722_v36 = vld [vmem:[#allocation5 + $0x7e0] sm:$0xff] }
  0x8a   : > { %548 = vmatpush1.msra.mxu0 %v504_v55  ;;  %v718_v38 = vld [vmem:[#allocation5 + $0x7c0] sm:$0xff]  ;;  %v683_v55 = vld [vmem:[#allocation5 + $0x6a8] sm:$0xff] }
  0x8b   : > { %549 = vmatprep.subr.mxu0 %v503_v56  ;;  %v714_v40 = vld [vmem:[#allocation5 + $0x7a0] sm:$0xff] }
  0x8c   : > { %550 = vmatpush1.msra.mxu0 %v502_v57  ;;  %v710_v42 = vld [vmem:[#allocation5 + $0x780] sm:$0xff]  ;;  %v679_v57 = vld [vmem:[#allocation5 + $0x688] sm:$0xff] }
  0x8d   : > { %551 = vmatprep.subr.mxu0 %v501_v58  ;;  %v706_v44 = vld [vmem:[#allocation5 + $0x760] sm:$0xff] }
  0x8e   : > { %552 = vmatpush1.msra.mxu0 %v500_v59  ;;  %v702_v46 = vld [vmem:[#allocation5 + $0x740] sm:$0xff]  ;;  %v675_v59 = vld [vmem:[#allocation5 + $0x668] sm:$0xff] }
  0x8f   : > { %553 = vmatprep.subr.mxu0 %v499_v60  ;;  %v698_v48 = vld [vmem:[#allocation5 + $0x720] sm:$0xff] }
  0x90   : > { %554 = vmatpush1.msra.mxu0 %v498_v61  ;;  %v694_v50 = vld [vmem:[#allocation5 + $0x700] sm:$0xff]  ;;  %v671_v61 = vld [vmem:[#allocation5 + $0x648] sm:$0xff] }
  0x91   : > { %555 = vmatprep.subr.mxu0 %v497_v62  ;;  %v690_v52 = vld [vmem:[#allocation5 + $0x6e0] sm:$0xff] }
  0x92   : > { %556 = vmatpush1.msra.mxu0 %v496_v63  ;;  %v686_v54 = vld [vmem:[#allocation5 + $0x6c0] sm:$0xff]  ;;  %v667_v63 = vld [vmem:[#allocation5 + $0x628] sm:$0xff] }
  0x93   : > { %557 = vmatprep.subr.mxu0 %v495_v0  ;;  %v682_v56 = vld [vmem:[#allocation5 + $0x6a0] sm:$0xff] }
  0x94   : > { %558 = vmatpush1.msra.mxu0 %v494_v26  ;;  %v678_v58 = vld [vmem:[#allocation5 + $0x680] sm:$0xff] }
  0x95   : > { %559 = vmatprep.subr.mxu0 %v493_v27  ;;  %v674_v60 = vld [vmem:[#allocation5 + $0x660] sm:$0xff] }
  0x96   : > { %560 = vmatpush1.msra.mxu0 %v492_v28  ;;  %v670_v62 = vld [vmem:[#allocation5 + $0x640] sm:$0xff] }
  0x97   : > { %561 = vmatprep.subr.mxu0 %v491_v29  ;;  %v666_v0 = vld [vmem:[#allocation5 + $0x620] sm:$0xff] }
  0x98   : > { %562 = vmatpush1.msra.mxu0 %v490_v30  ;;  %v742_v26 = vld [vmem:[#allocation5 + $0x880] sm:$0xff] }
  0x99   : > { %563 = vmatprep.subr.mxu0 %v489_v31  ;;  %v3117_v28 = vld [vmem:[#allocation7 + $0x1] ss:$0 sm:$0xff] }
  0x9a   : > { %564 = vmatpush1.msra.mxu0 %v488_v32 }
  0x9b   : > { %926 = vmatprep.subr.mxu0 %v725_v35  ;;  %v724_v35 = vld [vmem:[#allocation5 + $0x7f0] sm:$0xff] }
 0x137   : > { %v2480_v2 = vpop.f32.mrf.mxu0 }
 0x138   : > { %v317_v3 = vadd.f32 %v2480_v2, %v244_v1  ;;  %v662_v2 = vld [vmem:[#allocation5 + $0x600] sm:$0xff] }
 0x139   : > { %v311_v4 = vpop.f32.mrf.mxu0 }
 0x13a   : > { %v312_v5 = vadd.f32 %v311_v4, %v244_v1  ;;  %v351_v9 = vmax.f32 %v317_v3, 0.0  ;;  %v787_v3 = vld [vmem:[#allocation5 + $0x9e8] sm:$0xff]  ;;  %v786_v4 = vld [vmem:[#allocation5 + $0x9e0] sm:$0xff] }
 0x13b   : > { %v2483_v6 = vpop.f32.mrf.mxu0 }
 0x13c   : > { %v327_v7 = vadd.f32 %v2483_v6, %v244_v1  ;;  %v350_v8 = vmax.f32 %v312_v5, 0.0  ;;  %v783_v5 = vld [vmem:[#allocation5 + $0x9c8] sm:$0xff]  ;;  %v782_v6 = vld [vmem:[#allocation5 + $0x9c0] sm:$0xff] }
 0x13d   : > { %v321_v10 = vpop.f32.mrf.mxu0 }
 0x13e   : > { %v322_v11 = vadd.f32 %v321_v10, %v244_v1  ;;  %2522 = vmatprep.mubr.f32.mxu1 %v350_v8  ;;  %v353_v12 = vmax.f32 %v327_v7, 0.0  ;;  %v779_v7 = vld [vmem:[#allocation5 + $0x9a8] sm:$0xff]  ;;  %v778_v8 = vld [vmem:[#allocation5 + $0x9a0] sm:$0xff] }
 0x13f   : > { %2523 = vmatmul.mubr.f32.vlgmr.msra.gmra.mxu1 %v351_v9  ;;  %v2486_v13 = vpop.f32.mrf.mxu0  ;;  %v775_v9 = vld [vmem:[#allocation5 + $0x988] sm:$0xff]  ;;  %v774_v10 = vld [vmem:[#allocation5 + $0x980] sm:$0xff] }
 0x140   : > { %v352_v14 = vmax.f32 %v322_v11, 0.0  ;;  %v337_v15 = vadd.f32 %v2486_v13, %v244_v1  ;;  %814 = vmatpush1.msra.mxu1 %v722_v36  ;;  %v771_v11 = vld [vmem:[#allocation5 + $0x968] sm:$0xff] }
 0x141   : > { %v331_v16 = vpop.f32.mrf.mxu0  ;;  %815 = vmatprep.subr.mxu1 %v719_v37  ;;  %v767_v13 = vld [vmem:[#allocation5 + $0x948] sm:$0xff]  ;;  %v721_v37 = vld [vmem:[#allocation5 + $0x7d8] sm:$0xff] }
 0x142   : > { %2525 = vmatprep.mubr.f32.mxu1 %v352_v14  ;;  %v332_v17 = vadd.f32 %v331_v16, %v244_v1  ;;  %v355_v18 = vmax.f32 %v337_v15, 0.0  ;;  %816 = vmatpush1.msra.mxu1 %v718_v38  ;;  %v766_v14 = vld [vmem:[#allocation5 + $0x940] sm:$0xff]  ;;  %v763_v15 = vld [vmem:[#allocation5 + $0x928] sm:$0xff]  ;;  %v720_v38 = vld [vmem:[#allocation5 + $0x7d0] sm:$0xff] }
 0x143   : > { %2526 = vmatmul.mubr.f32.gmra.mxu1 %v353_v12  ;;  %v2489_v19 = vpop.f32.mrf.mxu0  ;;  %817 = vmatprep.subr.mxu1 %v715_v39  ;;  %v770_v12 = vld [vmem:[#allocation5 + $0x960] sm:$0xff]  ;;  %v717_v39 = vld [vmem:[#allocation5 + $0x7b8] sm:$0xff] }
 0x144   : > { %v354_v20 = vmax.f32 %v332_v17, 0.0  ;;  %v347_v21 = vadd.f32 %v2489_v19, %v244_v1  ;;  %818 = vmatpush1.msra.mxu1 %v714_v40  ;;  %v762_v16 = vld [vmem:[#allocation5 + $0x920] sm:$0xff]  ;;  %v759_v17 = vld [vmem:[#allocation5 + $0x908] sm:$0xff] }
 0x145   : > { %v341_v22 = vpop.f32.mrf.mxu0  ;;  %819 = vmatprep.subr.mxu1 %v711_v41  ;;  %v755_v19 = vld [vmem:[#allocation5 + $0x8e8] sm:$0xff] }
 0x146   : > { %2528 = vmatprep.mubr.f32.mxu1 %v354_v20  ;;  %v342_v23 = vadd.f32 %v341_v22, %v244_v1  ;;  %v357_v24 = vmax.f32 %v347_v21, 0.0  ;;  %820 = vmatpush1.msra.mxu1 %v710_v42  ;;  %v663_v1 = vld [vmem:[#allocation5 + $0x608] sm:$0xff]  ;;  %v754_v20 = vld [vmem:[#allocation5 + $0x8e0] sm:$0xff]  ;;  %v716_v42 = vld [vmem:[#allocation5 + $0x7b0] sm:$0xff] }
 0x147   : > { %2529 = vmatmul.mubr.f32.gmra.mxu1 %v355_v18  ;;  %821 = vmatprep.subr.mxu1 %v707_v43  ;;  %v758_v18 = vld [vmem:[#allocation5 + $0x900] sm:$0xff]  ;;  %v751_v21 = vld [vmem:[#allocation5 + $0x8c8] sm:$0xff] }
 0x148   : > { %v356_v25 = vmax.f32 %v342_v23, 0.0  ;;  %822 = vmatpush1.msra.mxu1 %v706_v44  ;;  %v750_v22 = vld [vmem:[#allocation5 + $0x8c0] sm:$0xff]  ;;  %v747_v23 = vld [vmem:[#allocation5 + $0x8a8] sm:$0xff]  ;;  %v713_v44 = vld [vmem:[#allocation5 + $0x798] sm:$0xff] }
 0x149   : > { %823 = vmatprep.subr.mxu1 %v703_v45  ;;  %v712_v45 = vld [vmem:[#allocation5 + $0x790] sm:$0xff] }
 0x14a   : > { %2531 = vmatprep.mubr.f32.mxu1 %v356_v25  ;;  %824 = vmatpush1.msra.mxu1 %v702_v46  ;;  %v743_v25 = vld [vmem:[#allocation5 + $0x888] sm:$0xff]  ;;  %v709_v46 = vld [vmem:[#allocation5 + $0x778] sm:$0xff] }
 0x14b   : > { %2532 = vmatmul.mubr.f32.gmra.mxu1 %v357_v24  ;;  %825 = vmatprep.subr.mxu1 %v699_v47  ;;  %v746_v24 = vld [vmem:[#allocation5 + $0x8a0] sm:$0xff] }
 0x14c   : > { %826 = vmatpush1.msra.mxu1 %v698_v48 }
 0x14d   : > { %827 = vmatprep.subr.mxu1 %v695_v49  ;;  %v708_v49 = vld [vmem:[#allocation5 + $0x770] sm:$0xff] }
 0x14e   : > { %828 = vmatpush1.msra.mxu1 %v694_v50 }
 0x14f   : > { %829 = vmatprep.subr.mxu1 %v691_v51  ;;  %v705_v51 = vld [vmem:[#allocation5 + $0x758] sm:$0xff] }
 0x150   : > { %830 = vmatpush1.msra.mxu1 %v690_v52  ;;  %v704_v52 = vld [vmem:[#allocation5 + $0x750] sm:$0xff] }
 0x151   : > { %831 = vmatprep.subr.mxu1 %v687_v53  ;;  %v701_v53 = vld [vmem:[#allocation5 + $0x738] sm:$0xff] }
 0x152   : > { %832 = vmatpush1.msra.mxu1 %v686_v54 }
 0x153   : > { %833 = vmatprep.subr.mxu1 %v683_v55 }
 0x154   : > { %834 = vmatpush1.msra.mxu1 %v682_v56  ;;  %v700_v56 = vld [vmem:[#allocation5 + $0x730] sm:$0xff] }
 0x155   : > { %835 = vmatprep.subr.mxu1 %v679_v57 }
 0x156   : > { %836 = vmatpush1.msra.mxu1 %v678_v58  ;;  %v697_v58 = vld [vmem:[#allocation5 + $0x718] sm:$0xff] }
 0x157   : > { %837 = vmatprep.subr.mxu1 %v675_v59  ;;  %v696_v59 = vld [vmem:[#allocation5 + $0x710] sm:$0xff] }
 0x158   : > { %838 = vmatpush1.msra.mxu1 %v674_v60  ;;  %v693_v60 = vld [vmem:[#allocation5 + $0x6f8] sm:$0xff] }
 0x159   : > { %839 = vmatprep.subr.mxu1 %v671_v61 }
 0x15a   : > { %840 = vmatpush1.msra.mxu1 %v670_v62 }
 0x15b   : > { %841 = vmatprep.subr.mxu1 %v667_v63  ;;  %v692_v63 = vld [vmem:[#allocation5 + $0x6f0] sm:$0xff] }
 0x15c   : > { %842 = vmatpush1.msra.mxu1 %v666_v0 }
 0x15d   : > { %843 = vmatprep.subr.mxu1 %v663_v1  ;;  %v689_v1 = vld [vmem:[#allocation5 + $0x6d8] sm:$0xff] }
 0x15e   : > { %844 = vmatpush1.msra.mxu1 %v662_v2  ;;  %v688_v2 = vld [vmem:[#allocation5 + $0x6d0] sm:$0xff] }
 0x15f   : > { %845 = vmatprep.subr.mxu1 %v787_v3  ;;  %v685_v3 = vld [vmem:[#allocation5 + $0x6b8] sm:$0xff] }
 0x160   : > { %846 = vmatpush2.msra.mxu1 %v786_v4 }
 0x161   : > { %847 = vmatprep.subr.mxu1 %v783_v5 }
 0x162   : > { %848 = vmatpush2.msra.mxu1 %v782_v6  ;;  %v684_v6 = vld [vmem:[#allocation5 + $0x6b0] sm:$0xff] }
 0x163   : > { %849 = vmatprep.subr.mxu1 %v779_v7  ;;  %v681_v7 = vld [vmem:[#allocation5 + $0x698] sm:$0xff] }
 0x164   : > { %850 = vmatpush2.msra.mxu1 %v778_v8  ;;  %v680_v8 = vld [vmem:[#allocation5 + $0x690] sm:$0xff] }
 0x165   : > { %851 = vmatprep.subr.mxu1 %v775_v9  ;;  %v677_v9 = vld [vmem:[#allocation5 + $0x678] sm:$0xff] }
 0x166   : > { %852 = vmatpush2.msra.mxu1 %v774_v10 }
 0x167   : > { %853 = vmatprep.subr.mxu1 %v771_v11 }
 0x168   : > { %854 = vmatpush2.msra.mxu1 %v770_v12  ;;  %v676_v12 = vld [vmem:[#allocation5 + $0x670] sm:$0xff] }
 0x169   : > { %855 = vmatprep.subr.mxu1 %v767_v13  ;;  %v673_v13 = vld [vmem:[#allocation5 + $0x658] sm:$0xff] }
 0x16a   : > { %856 = vmatpush2.msra.mxu1 %v766_v14  ;;  %v672_v14 = vld [vmem:[#allocation5 + $0x650] sm:$0xff] }
 0x16b   : > { %857 = vmatprep.subr.mxu1 %v763_v15  ;;  %v669_v15 = vld [vmem:[#allocation5 + $0x638] sm:$0xff] }
 0x16c   : > { %858 = vmatpush2.msra.mxu1 %v762_v16 }
 0x16d   : > { %859 = vmatprep.subr.mxu1 %v759_v17  ;;  %v668_v17 = vld [vmem:[#allocation5 + $0x630] sm:$0xff] }
 0x16e   : > { %860 = vmatpush2.msra.mxu1 %v758_v18  ;;  %v665_v18 = vld [vmem:[#allocation5 + $0x618] sm:$0xff] }
 0x16f   : > { %861 = vmatprep.subr.mxu1 %v755_v19  ;;  %v664_v19 = vld [vmem:[#allocation5 + $0x610] sm:$0xff] }
 0x170   : > { %862 = vmatpush2.msra.mxu1 %v754_v20  ;;  %v789_v20 = vld [vmem:[#allocation5 + $0x9f8] sm:$0xff] }
 0x171   : > { %863 = vmatprep.subr.mxu1 %v751_v21  ;;  %v788_v21 = vld [vmem:[#allocation5 + $0x9f0] sm:$0xff] }
 0x172   : > { %864 = vmatpush2.msra.mxu1 %v750_v22  ;;  %v785_v22 = vld [vmem:[#allocation5 + $0x9d8] sm:$0xff] }
 0x173   : > { %865 = vmatprep.subr.mxu1 %v747_v23  ;;  %v784_v23 = vld [vmem:[#allocation5 + $0x9d0] sm:$0xff] }
 0x174   : > { %866 = vmatpush2.msra.mxu1 %v746_v24  ;;  %v780_v24 = vld [vmem:[#allocation5 + $0x9b0] sm:$0xff] }
 0x175   : > { %867 = vmatprep.subr.mxu1 %v743_v25  ;;  %v777_v25 = vld [vmem:[#allocation5 + $0x998] sm:$0xff] }
 0x176   : > { %868 = vmatpush2.msra.mxu1 %v742_v26  ;;  %v776_v26 = vld [vmem:[#allocation5 + $0x990] sm:$0xff] }
 0x1ff   : > { %v2524_v27 = vpop.f32.mrf.mxu1 }
 0x200   : > { %v447_v32 = vadd.f32 %v2524_v27, %v3117_v28  ;;  %v773_v27 = vld [vmem:[#allocation5 + $0x978] sm:$0xff] }
 0x201   : > { %v441_v29 = vpop.f32.mrf.mxu1 }
 0x202   : > { %v442_v30 = vadd.f32 %v441_v29, %v3117_v28  ;;  %v481_v40 = vmax.f32 %v447_v32, 0.0  ;;  %v769_v29 = vld [vmem:[#allocation5 + $0x958] sm:$0xff]  ;;  %v764_v32 = vld [vmem:[#allocation5 + $0x930] sm:$0xff] }
 0x203   : > { %v2527_v31 = vpop.f32.mrf.mxu1 }
 0x204   : > { %v480_v34 = vmax.f32 %v442_v30, 0.0  ;;  %v457_v47 = vadd.f32 %v2527_v31, %v3117_v28  ;;  %v768_v30 = vld [vmem:[#allocation5 + $0x950] sm:$0xff]  ;;  %v765_v31 = vld [vmem:[#allocation5 + $0x938] sm:$0xff] }
 0x205   : > { %v451_v36 = vpop.f32.mrf.mxu1 }
 0x206   : > { %598 = vmatmul.mubr.f32.vlgmr.msra.gmra.mxu0 %v480_v34  ;;  %v452_v41 = vadd.f32 %v451_v36, %v3117_v28  ;;  %v483_v54 = vmax.f32 %v457_v47, 0.0  ;;  %v761_v34 = vld [vmem:[#allocation5 + $0x918] sm:$0xff]  ;;  %v740_v47 = vld [vmem:[#allocation5 + $0x870] sm:$0xff] }
 0x207   : > { %603 = vmatprep.mubr.f32.mxu0 %v2941_v33  ;;  %927 = vmatpush1.msra.mxu0 %v724_v35  ;;  %v2530_v43 = vpop.f32.mrf.mxu1  ;;  %v760_v35 = vld [vmem:[#allocation5 + $0x910] sm:$0xff]  ;;  %v757_v36 = vld [vmem:[#allocation5 + $0x8f8] sm:$0xff] }
 0x208   : > { %928 = vmatprep.subr.mxu0 %v721_v37  ;;  %v482_v48 = vmax.f32 %v452_v41, 0.0  ;;  %v467_v61 = vadd.f32 %v2530_v43, %v3117_v28  ;;  %v756_v37 = vld [vmem:[#allocation5 + $0x8f0] sm:$0xff] }
 0x209   : > { %929 = vmatpush1.msra.mxu0 %v720_v38  ;;  %v461_v50 = vpop.f32.mrf.mxu1  ;;  %v753_v38 = vld [vmem:[#allocation5 + $0x8d8] sm:$0xff]  ;;  %v748_v41 = vld [vmem:[#allocation5 + $0x8b0] sm:$0xff] }
 0x20a   : > { %604 = vmatmul.mubr.f32.gmra.mxu0 %v481_v40  ;;  %930 = vmatprep.subr.mxu0 %v717_v39  ;;  %v462_v55 = vadd.f32 %v461_v50, %v3117_v28  ;;  %v485_v4 = vmax.f32 %v467_v61, 0.0  ;;  %v752_v39 = vld [vmem:[#allocation5 + $0x8d0] sm:$0xff]  ;;  %v749_v40 = vld [vmem:[#allocation5 + $0x8b8] sm:$0xff]  ;;  %v734_v50 = vld [vmem:[#allocation5 + $0x840] sm:$0xff] }
 0x20b   : > { %609 = vmatprep.mubr.f32.mxu0 %v2941_v33  ;;  %931 = vmatpush1.msra.mxu0 %v716_v42  ;;  %v2533_v57 = vpop.f32.mrf.mxu1  ;;  %v745_v42 = vld [vmem:[#allocation5 + $0x898] sm:$0xff]  ;;  %v744_v43 = vld [vmem:[#allocation5 + $0x890] sm:$0xff]  ;;  %v1166_v61 = vld [vmem:[#allocation5 + $0xfe8] sm:$0xff] }
 0x20c   : > { %932 = vmatprep.subr.mxu0 %v713_v44  ;;  %v484_v62 = vmax.f32 %v462_v55, 0.0  ;;  %v477_v10 = vadd.f32 %v2533_v57, %v3117_v28  ;;  %v739_v44 = vld [vmem:[#allocation5 + $0x868] sm:$0xff]  ;;  %v732_v55 = vld [vmem:[#allocation5 + $0x830] sm:$0xff]  ;;  %v729_v57 = vld [vmem:[#allocation5 + $0x818] sm:$0xff] }
 0x20d   : > { %933 = vmatpush1.msra.mxu0 %v712_v45  ;;  %v471_v0 = vpop.f32.mrf.mxu1  ;;  %v741_v45 = vld [vmem:[#allocation5 + $0x878] sm:$0xff]  ;;  %869 = vmatprep.subr.mxu1 %v739_v44  ;;  %v1095_v44 = vld [vmem:[#allocation5 + $0xb80] sm:$0xff] }
 0x20e   : > { %610 = vmatmul.mubr.f32.gmra.mxu0 %v482_v48  ;;  %934 = vmatprep.subr.mxu0 %v709_v46  ;;  %v472_v5 = vadd.f32 %v471_v0, %v3117_v28  ;;  %v487_v16 = vmax.f32 %v477_v10, 0.0  ;;  %v772_v28 = vld [vmem:[#allocation5 + $0x970] sm:$0xff]  ;;  %v738_v46 = vld [vmem:[#allocation5 + $0x860] sm:$0xff]  ;;  %v735_v48 = vld [vmem:[#allocation5 + $0x848] sm:$0xff] }
 0x20f   : > { %615 = vmatprep.mubr.f32.mxu0 %v2941_v33  ;;  %935 = vmatpush1.msra.mxu0 %v708_v49  ;;  %v737_v49 = vld [vmem:[#allocation5 + $0x858] sm:$0xff] }
 0x210   : > { %936 = vmatprep.subr.mxu0 %v705_v51  ;;  %v486_v11 = vmax.f32 %v472_v5, 0.0  ;;  %870 = vmatpush2.msra.mxu1 %v738_v46  ;;  %v736_v51 = vld [vmem:[#allocation5 + $0x850] sm:$0xff] }
 0x211   : > { %937 = vmatpush1.msra.mxu0 %v704_v52  ;;  %871 = vmatprep.subr.mxu1 %v735_v48  ;;  %v731_v52 = vld [vmem:[#allocation5 + $0x828] sm:$0xff] }
 0x212   : > { %616 = vmatmul.mubr.f32.gmra.mxu0 %v483_v54  ;;  %938 = vmatprep.subr.mxu0 %v701_v53  ;;  %v733_v53 = vld [vmem:[#allocation5 + $0x838] sm:$0xff]  ;;  %v730_v54 = vld [vmem:[#allocation5 + $0x820] sm:$0xff]  ;;  %v1158_v48 = vld [vmem:[#allocation5 + $0xf68] sm:$0xff] }
 0x213   : > { %621 = vmatprep.mubr.f32.mxu0 %v2941_v33  ;;  %939 = vmatpush1.msra.mxu0 %v700_v56  ;;  %v727_v56 = vld [vmem:[#allocation5 + $0x808] sm:$0xff] }
 0x214   : > { %940 = vmatprep.subr.mxu0 %v697_v58  ;;  %872 = vmatpush2.msra.mxu1 %v734_v50  ;;  %v726_v58 = vld [vmem:[#allocation5 + $0x800] sm:$0xff] }
 0x215   : > { %941 = vmatpush1.msra.mxu0 %v696_v59  ;;  %873 = vmatprep.subr.mxu1 %v731_v52  ;;  %v728_v59 = vld [vmem:[#allocation5 + $0x810] sm:$0xff] }
 0x216   : > { %622 = vmatmul.mubr.f32.gmra.mxu0 %v484_v62  ;;  %942 = vmatprep.subr.mxu0 %v693_v60  ;;  %v1102_v60 = vld [vmem:[#allocation5 + $0xbe8] sm:$0xff]  ;;  %v523_v62 = vlaneseq }
 0x217   : > { %627 = vmatprep.mubr.f32.mxu0 %v2941_v33  ;;  %943 = vmatpush1.msra.mxu0 %v692_v63 }
 0x218   : > { %944 = vmatprep.subr.mxu0 %v689_v1  ;;  %874 = vmatpush2.msra.mxu1 %v730_v54  ;;  %v3134_v63 = vshrl.u32 %v523_v62, 7  ;;  %v521_v1 = vld [vmem:[#allocation7 + $0x2] ss:$8 sm:$0x3] }
 0x219   : > { %945 = vmatpush1.msra.mxu0 %v688_v2  ;;  %875 = vmatprep.subr.mxu1 %v727_v56  ;;  %v1093_v54 = vld [vmem:[#allocation5 + $0xb60] sm:$0xff] }
 0x21a   : > { %628 = vmatmul.mubr.f32.gmra.mxu0 %v485_v4  ;;  %946 = vmatprep.subr.mxu0 %v685_v3  ;;  %v3137_v0 = vsub.s32 0, %v3134_v63  ;;  %v3140_v2 = vsub.s32 1, %v3134_v63 }
 0x21b   : > { %633 = vmatprep.mubr.f32.mxu0 %v2941_v33  ;;  %947 = vmatpush1.msra.mxu0 %v684_v6 }
 0x21c   : > { %948 = vmatprep.subr.mxu0 %v681_v7  ;;  %876 = vmatpush2.msra.mxu1 %v726_v58  ;;  %v3143_v3 = vrot.slane %v521_v1, %v3137_v0  ;;  %v3146_v4 = vrot.slane %v521_v1, %v3140_v2  ;;  %v1156_v58 = vld [vmem:[#allocation5 + $0xf48] sm:$0xff] }
 0x21d   : > { %949 = vmatpush1.msra.mxu0 %v680_v8  ;;  %1212 = vmatprep.subr.mxu1 %v1102_v60 }
 0x21e   : > { %634 = vmatmul.mubr.f32.gmra.mxu0 %v486_v11  ;;  %950 = vmatprep.subr.mxu0 %v677_v9 }
 0x21f   : > { %639 = vmatprep.mubr.f32.mxu0 %v2941_v33  ;;  %951 = vmatpush1.msra.mxu0 %v676_v12  ;;  %v781_v33 = vld [vmem:[#allocation5 + $0x9b8] sm:$0xff] }
 0x220   : > { %952 = vmatprep.subr.mxu0 %v673_v13 }
 0x221   : > { %953 = vmatpush1.msra.mxu0 %v672_v14  ;;  %v1101_v14 = vld [vmem:[#allocation5 + $0xbe0] sm:$0xff] }
 0x222   : > { %640 = vmatmul.mubr.f32.gmra.mxu0 %v487_v16  ;;  %954 = vmatprep.subr.mxu0 %v669_v15  ;;  %v1165_v15 = vld [vmem:[#allocation5 + $0xfe0] sm:$0xff] }
 0x223   : > { %955 = vmatpush1.msra.mxu0 %v668_v17  ;;  %v1100_v17 = vld [vmem:[#allocation5 + $0xbc8] sm:$0xff] }
 0x224   : > { %956 = vmatprep.subr.mxu0 %v665_v18  ;;  %v1164_v18 = vld [vmem:[#allocation5 + $0xfc8] sm:$0xff] }
 0x225   : > { %957 = vmatpush1.msra.mxu0 %v664_v19 }
 0x226   : > { %958 = vmatprep.subr.mxu0 %v789_v20 }
 0x227   : > { %959 = vmatpush2.msra.mxu0 %v788_v21 }
 0x228   : > { %960 = vmatprep.subr.mxu0 %v785_v22 }
 0x229   : > { %961 = vmatpush2.msra.mxu0 %v784_v23 }
 0x22a   : > { %962 = vmatprep.subr.mxu0 %v781_v33  ;;  %v1099_v33 = vld [vmem:[#allocation5 + $0xbc0] sm:$0xff] }
 0x22b   : > { %963 = vmatpush2.msra.mxu0 %v780_v24  ;;  %v1163_v24 = vld [vmem:[#allocation5 + $0xfc0] sm:$0xff] }
 0x22c   : > { %964 = vmatprep.subr.mxu0 %v777_v25 }
 0x22d   : > { %965 = vmatpush2.msra.mxu0 %v776_v26  ;;  %v1098_v26 = vld [vmem:[#allocation5 + $0xba8] sm:$0xff] }
 0x22e   : > { %966 = vmatprep.subr.mxu0 %v773_v27  ;;  %v1162_v27 = vld [vmem:[#allocation5 + $0xfa8] sm:$0xff] }
 0x22f   : > { %967 = vmatpush2.msra.mxu0 %v772_v28 }
 0x230   : > { %968 = vmatprep.subr.mxu0 %v769_v29 }
 0x231   : > { %969 = vmatpush2.msra.mxu0 %v768_v30 }
 0x232   : > { %970 = vmatprep.subr.mxu0 %v765_v31 }
 0x233   : > { %971 = vmatpush2.msra.mxu0 %v764_v32 }
 0x234   : > { %972 = vmatprep.subr.mxu0 %v761_v34  ;;  %v1097_v34 = vld [vmem:[#allocation5 + $0xba0] sm:$0xff] }
 0x235   : > { %973 = vmatpush2.msra.mxu0 %v760_v35  ;;  %v1161_v35 = vld [vmem:[#allocation5 + $0xfa0] sm:$0xff] }
 0x236   : > { %974 = vmatprep.subr.mxu0 %v757_v36 }
 0x237   : > { %975 = vmatpush2.msra.mxu0 %v756_v37  ;;  %v1096_v37 = vld [vmem:[#allocation5 + $0xb88] sm:$0xff] }
 0x238   : > { %976 = vmatprep.subr.mxu0 %v753_v38  ;;  %v1160_v38 = vld [vmem:[#allocation5 + $0xf88] sm:$0xff] }
 0x239   : > { %977 = vmatpush2.msra.mxu0 %v752_v39 }
 0x23a   : > { %978 = vmatprep.subr.mxu0 %v749_v40 }
 0x23b   : > { %979 = vmatpush2.msra.mxu0 %v748_v41 }
 0x23c   : > { %980 = vmatprep.subr.mxu0 %v745_v42 }
 0x23d   : > { %981 = vmatpush2.msra.mxu0 %v744_v43 }
 0x23e   : > { %982 = vmatprep.subr.mxu0 %v741_v45  ;;  %v1159_v45 = vld [vmem:[#allocation5 + $0xf80] sm:$0xff] }
 0x23f   : > { %983 = vmatpush2.msra.mxu0 %v740_v47  ;;  %v1094_v47 = vld [vmem:[#allocation5 + $0xb68] sm:$0xff] }
 0x240   : > { %984 = vmatprep.subr.mxu0 %v737_v49 }
 0x241   : > { %985 = vmatpush2.msra.mxu0 %v736_v51 }
 0x242   : > { %986 = vmatprep.subr.mxu0 %v733_v53 }
 0x243   : > { %987 = vmatpush2.msra.mxu0 %v732_v55  ;;  %v1157_v55 = vld [vmem:[#allocation5 + $0xf60] sm:$0xff] }
 0x244   : > { %988 = vmatprep.subr.mxu0 %v729_v57  ;;  %v1092_v57 = vld [vmem:[#allocation5 + $0xb48] sm:$0xff] }
 0x245   : > { %989 = vmatpush2.msra.mxu0 %v728_v59 }
 0x246   : > { %1325 = vmatprep.subr.mxu0 %v1166_v61 }
 0x2c6   : > { %v599_v5 = vpop.f32.mrf.mxu0 }
 0x2c7   : > { %v600_v6 = vadd.f32 %v599_v5, %v3143_v3  ;;  %v1091_v5 = vld [vmem:[#allocation5 + $0xb40] sm:$0xff] }
 0x2c8   : > { %v601_v7 = vpop.f32.mrf.mxu0 }
 0x2c9   : > { %v602_v8 = vadd.f32 %v601_v7, %v3146_v4  ;;  %v646_v11 = vmax.f32 %v600_v6, 0.0  ;;  %v1155_v6 = vld [vmem:[#allocation5 + $0xf40] sm:$0xff] }
 0x2ca   : > { %v605_v9 = vpop.f32.mrf.mxu0 }
 0x2cb   : > { %v647_v10 = vmax.f32 %v602_v8, 0.0  ;;  %v606_v12 = vadd.f32 %v605_v9, %v3143_v3  ;;  %v1090_v8 = vld [vmem:[#allocation5 + $0xb28] sm:$0xff] }
 0x2cc   : > { %v607_v13 = vpop.f32.mrf.mxu0  ;;  %v1154_v9 = vld [vmem:[#allocation5 + $0xf28] sm:$0xff] }
 0x2cd   : > { %v608_v16 = vadd.f32 %v607_v13, %v3146_v4  ;;  %877 = vmatprep.mubr.f32.mxu1 %v647_v10  ;;  %990 = vmatprep.mubr.f32.mxu0 %v647_v10  ;;  %v648_v21 = vmax.f32 %v606_v12, 0.0 }
 0x2ce   : > { %v611_v19 = vpop.f32.mrf.mxu0  ;;  %878 = vmatmul.mubr.f32.vlgmr.msra.gmra.mxu1 %v646_v11  ;;  %991 = vmatmul.mubr.f32.vlgmr.msra.gmra.mxu0 %v646_v11 }
 0x2cf   : > { %v649_v20 = vmax.f32 %v608_v16, 0.0  ;;  %1213 = vmatpush1.msra.mxu1 %v1101_v14  ;;  %1326 = vmatpush1.msra.mxu0 %v1165_v15  ;;  %v612_v22 = vadd.f32 %v611_v19, %v3143_v3  ;;  %v1089_v15 = vld [vmem:[#allocation5 + $0xb20] sm:$0xff]  ;;  %v1152_v19 = vld [vmem:[#allocation5 + $0xf08] sm:$0xff] }
 0x2d0   : > { %v613_v23 = vpop.f32.mrf.mxu0  ;;  %1214 = vmatprep.subr.mxu1 %v1100_v17  ;;  %1327 = vmatprep.subr.mxu0 %v1164_v18  ;;  %v1153_v16 = vld [vmem:[#allocation5 + $0xf20] sm:$0xff]  ;;  %v1088_v18 = vld [vmem:[#allocation5 + $0xb08] sm:$0xff] }
 0x2d1   : > { %v614_v25 = vadd.f32 %v613_v23, %v3146_v4  ;;  %883 = vmatprep.mubr.f32.mxu1 %v649_v20  ;;  %996 = vmatprep.mubr.f32.mxu0 %v649_v20  ;;  %v650_v30 = vmax.f32 %v612_v22, 0.0  ;;  %v1151_v22 = vld [vmem:[#allocation5 + $0xf00] sm:$0xff]  ;;  %v1086_v23 = vld [vmem:[#allocation5 + $0xae8] sm:$0xff] }
 0x2d2   : > { %v617_v28 = vpop.f32.mrf.mxu0  ;;  %884 = vmatmul.mubr.f32.gmra.mxu1 %v648_v21  ;;  %997 = vmatmul.mubr.f32.gmra.mxu0 %v648_v21 }
 0x2d3   : > { %v651_v29 = vmax.f32 %v614_v25, 0.0  ;;  %1215 = vmatpush1.msra.mxu1 %v1099_v33  ;;  %1328 = vmatpush1.msra.mxu0 %v1163_v24  ;;  %v618_v31 = vadd.f32 %v617_v28, %v3143_v3  ;;  %v1150_v33 = vld [vmem:[#allocation5 + $0xee8] sm:$0xff]  ;;  %v1149_v24 = vld [vmem:[#allocation5 + $0xee0] sm:$0xff] }
 0x2d4   : > { %v619_v32 = vpop.f32.mrf.mxu0  ;;  %1216 = vmatprep.subr.mxu1 %v1098_v26  ;;  %1329 = vmatprep.subr.mxu0 %v1162_v27  ;;  %v1084_v25 = vld [vmem:[#allocation5 + $0xac8] sm:$0xff]  ;;  %v1083_v27 = vld [vmem:[#allocation5 + $0xac0] sm:$0xff] }
 0x2d5   : > { %v620_v36 = vadd.f32 %v619_v32, %v3146_v4  ;;  %889 = vmatprep.mubr.f32.mxu1 %v651_v29  ;;  %1002 = vmatprep.mubr.f32.mxu0 %v651_v29  ;;  %v652_v41 = vmax.f32 %v618_v31, 0.0  ;;  %v1148_v26 = vld [vmem:[#allocation5 + $0xec8] sm:$0xff]  ;;  %v1147_v28 = vld [vmem:[#allocation5 + $0xec0] sm:$0xff] }
 0x2d6   : > { %v623_v39 = vpop.f32.mrf.mxu0  ;;  %890 = vmatmul.mubr.f32.gmra.mxu1 %v650_v30  ;;  %1003 = vmatmul.mubr.f32.gmra.mxu0 %v650_v30  ;;  %v1082_v29 = vld [vmem:[#allocation5 + $0xaa8] sm:$0xff]  ;;  %v1081_v31 = vld [vmem:[#allocation5 + $0xaa0] sm:$0xff] }
 0x2d7   : > { %v653_v40 = vmax.f32 %v620_v36, 0.0  ;;  %1217 = vmatpush1.msra.mxu1 %v1097_v34  ;;  %1330 = vmatpush1.msra.mxu0 %v1161_v35  ;;  %v624_v42 = vadd.f32 %v623_v39, %v3143_v3  ;;  %v1146_v30 = vld [vmem:[#allocation5 + $0xea8] sm:$0xff]  ;;  %v1145_v32 = vld [vmem:[#allocation5 + $0xea0] sm:$0xff] }
 0x2d8   : > { %v625_v43 = vpop.f32.mrf.mxu0  ;;  %1218 = vmatprep.subr.mxu1 %v1096_v37  ;;  %1331 = vmatprep.subr.mxu0 %v1160_v38  ;;  %v1080_v34 = vld [vmem:[#allocation5 + $0xa88] sm:$0xff]  ;;  %v1079_v36 = vld [vmem:[#allocation5 + $0xa80] sm:$0xff] }
 0x2d9   : > { %v626_v46 = vadd.f32 %v625_v43, %v3146_v4  ;;  %895 = vmatprep.mubr.f32.mxu1 %v653_v40  ;;  %1008 = vmatprep.mubr.f32.mxu0 %v653_v40  ;;  %v654_v51 = vmax.f32 %v624_v42, 0.0  ;;  %v1144_v35 = vld [vmem:[#allocation5 + $0xe88] sm:$0xff]  ;;  %v1143_v37 = vld [vmem:[#allocation5 + $0xe80] sm:$0xff] }
 0x2da   : > { %v629_v49 = vpop.f32.mrf.mxu0  ;;  %896 = vmatmul.mubr.f32.gmra.mxu1 %v652_v41  ;;  %1009 = vmatmul.mubr.f32.gmra.mxu0 %v652_v41  ;;  %v1078_v38 = vld [vmem:[#allocation5 + $0xa68] sm:$0xff]  ;;  %v1077_v40 = vld [vmem:[#allocation5 + $0xa60] sm:$0xff] }
 0x2db   : > { %v655_v50 = vmax.f32 %v626_v46, 0.0  ;;  %1219 = vmatpush1.msra.mxu1 %v1095_v44  ;;  %1332 = vmatpush1.msra.mxu0 %v1159_v45  ;;  %v630_v52 = vadd.f32 %v629_v49, %v3143_v3  ;;  %v1142_v39 = vld [vmem:[#allocation5 + $0xe68] sm:$0xff]  ;;  %v1141_v41 = vld [vmem:[#allocation5 + $0xe60] sm:$0xff] }
 0x2dc   : > { %v631_v53 = vpop.f32.mrf.mxu0  ;;  %1220 = vmatprep.subr.mxu1 %v1094_v47  ;;  %1333 = vmatprep.subr.mxu0 %v1158_v48  ;;  %v1076_v42 = vld [vmem:[#allocation5 + $0xa48] sm:$0xff]  ;;  %v1075_v44 = vld [vmem:[#allocation5 + $0xa40] sm:$0xff] }
 0x2dd   : > { %v632_v56 = vadd.f32 %v631_v53, %v3146_v4  ;;  %901 = vmatprep.mubr.f32.mxu1 %v655_v50  ;;  %1014 = vmatprep.mubr.f32.mxu0 %v655_v50  ;;  %v656_v61 = vmax.f32 %v630_v52, 0.0  ;;  %v1140_v43 = vld [vmem:[#allocation5 + $0xe48] sm:$0xff]  ;;  %v1139_v45 = vld [vmem:[#allocation5 + $0xe40] sm:$0xff] }
 0x2de   : > { %v635_v59 = vpop.f32.mrf.mxu0  ;;  %902 = vmatmul.mubr.f32.gmra.mxu1 %v654_v51  ;;  %1015 = vmatmul.mubr.f32.gmra.mxu0 %v654_v51  ;;  %v1074_v46 = vld [vmem:[#allocation5 + $0xa28] sm:$0xff]  ;;  %v1073_v48 = vld [vmem:[#allocation5 + $0xa20] sm:$0xff] }
 0x2df   : > { %v657_v60 = vmax.f32 %v632_v56, 0.0  ;;  %1221 = vmatpush1.msra.mxu1 %v1093_v54  ;;  %1334 = vmatpush1.msra.mxu0 %v1157_v55  ;;  %v636_v62 = vadd.f32 %v635_v59, %v3143_v3  ;;  %v1138_v47 = vld [vmem:[#allocation5 + $0xe28] sm:$0xff]  ;;  %v1137_v49 = vld [vmem:[#allocation5 + $0xe20] sm:$0xff] }
 0x2e0   : > { %v637_v1 = vpop.f32.mrf.mxu0  ;;  %1222 = vmatprep.subr.mxu1 %v1092_v57  ;;  %1335 = vmatprep.subr.mxu0 %v1156_v58  ;;  %v1072_v50 = vld [vmem:[#allocation5 + $0xa08] sm:$0xff]  ;;  %v1071_v52 = vld [vmem:[#allocation5 + $0xa00] sm:$0xff] }
 0x2e1   : > { %v638_v7 = vadd.f32 %v637_v1, %v3146_v4  ;;  %907 = vmatprep.mubr.f32.mxu1 %v657_v60  ;;  %1020 = vmatprep.mubr.f32.mxu0 %v657_v60  ;;  %v658_v12 = vmax.f32 %v636_v62, 0.0  ;;  %v1136_v51 = vld [vmem:[#allocation5 + $0xe08] sm:$0xff]  ;;  %v1135_v53 = vld [vmem:[#allocation5 + $0xe00] sm:$0xff] }
 0x2e2   : > { %v641_v10 = vpop.f32.mrf.mxu0  ;;  %908 = vmatmul.mubr.f32.gmra.mxu1 %v656_v61  ;;  %1021 = vmatmul.mubr.f32.gmra.mxu0 %v656_v61  ;;  %v1134_v54 = vld [vmem:[#allocation5 + $0xde8] sm:$0xff]  ;;  %v1133_v56 = vld [vmem:[#allocation5 + $0xde0] sm:$0xff] }
 0x2e3   : > { %v659_v11 = vmax.f32 %v638_v7, 0.0  ;;  %1223 = vmatpush1.msra.mxu1 %v1091_v5  ;;  %1336 = vmatpush1.msra.mxu0 %v1155_v6  ;;  %v642_v13 = vadd.f32 %v641_v10, %v3143_v3  ;;  %v1087_v3 = vld [vmem:[#allocation5 + $0xb00] sm:$0xff]  ;;  %v1198_v55 = vld [vmem:[#allocation5 + $0x11e8] sm:$0xff] }
 0x2e4   : > { %v643_v14 = vpop.f32.mrf.mxu0  ;;  %1224 = vmatprep.subr.mxu1 %v1090_v8  ;;  %1337 = vmatprep.subr.mxu0 %v1154_v9  ;;  %v1197_v57 = vld [vmem:[#allocation5 + $0x11e0] sm:$0xff]  ;;  %v1132_v58 = vld [vmem:[#allocation5 + $0xdc8] sm:$0xff] }
 0x2e5   : > { %v644_v17 = vadd.f32 %v643_v14, %v3146_v4  ;;  %913 = vmatprep.mubr.f32.mxu1 %v659_v11  ;;  %1026 = vmatprep.mubr.f32.mxu0 %v659_v11  ;;  %v660_v21 = vmax.f32 %v642_v13, 0.0  ;;  %v1085_v4 = vld [vmem:[#allocation5 + $0xae0] sm:$0xff]  ;;  %v1196_v59 = vld [vmem:[#allocation5 + $0x11c8] sm:$0xff] }
 0x2e6   : > { %914 = vmatmul.mubr.f32.gmra.mxu1 %v658_v12  ;;  %1027 = vmatmul.mubr.f32.gmra.mxu0 %v658_v12  ;;  %v1131_v60 = vld [vmem:[#allocation5 + $0xdc0] sm:$0xff]  ;;  %v1130_v62 = vld [vmem:[#allocation5 + $0xda8] sm:$0xff] }
 0x2e7   : > { %v661_v20 = vmax.f32 %v644_v17, 0.0  ;;  %1225 = vmatpush1.msra.mxu1 %v1089_v15  ;;  %1338 = vmatpush1.msra.mxu0 %v1153_v16  ;;  %v1195_v61 = vld [vmem:[#allocation5 + $0x11c0] sm:$0xff]  ;;  %v1194_v1 = vld [vmem:[#allocation5 + $0x11a8] sm:$0xff] }
 0x2e8   : > { %1226 = vmatprep.subr.mxu1 %v1088_v18  ;;  %1339 = vmatprep.subr.mxu0 %v1152_v19  ;;  %v1129_v5 = vld [vmem:[#allocation5 + $0xda0] sm:$0xff]  ;;  %v1128_v7 = vld [vmem:[#allocation5 + $0xd88] sm:$0xff] }
 0x2e9   : > { %919 = vmatprep.mubr.f32.mxu1 %v661_v20  ;;  %1032 = vmatprep.mubr.f32.mxu0 %v661_v20  ;;  %v1193_v6 = vld [vmem:[#allocation5 + $0x11a0] sm:$0xff]  ;;  %v1192_v8 = vld [vmem:[#allocation5 + $0x1188] sm:$0xff] }
 0x2ea   : > { %920 = vmatmul.mubr.f32.gmra.mxu1 %v660_v21  ;;  %1033 = vmatmul.mubr.f32.gmra.mxu0 %v660_v21  ;;  %v1127_v9 = vld [vmem:[#allocation5 + $0xd80] sm:$0xff]  ;;  %v1126_v11 = vld [vmem:[#allocation5 + $0xd68] sm:$0xff] }
 0x2eb   : > { %1227 = vmatpush1.msra.mxu1 %v1087_v3  ;;  %1340 = vmatpush1.msra.mxu0 %v1151_v22  ;;  %v1191_v10 = vld [vmem:[#allocation5 + $0x1180] sm:$0xff]  ;;  %v1190_v12 = vld [vmem:[#allocation5 + $0x1168] sm:$0xff] }
 0x2ec   : > { %1228 = vmatprep.subr.mxu1 %v1086_v23  ;;  %1341 = vmatprep.subr.mxu0 %v1150_v33  ;;  %v1125_v13 = vld [vmem:[#allocation5 + $0xd60] sm:$0xff]  ;;  %v1124_v15 = vld [vmem:[#allocation5 + $0xd48] sm:$0xff] }
 0x2ed   : > { %1229 = vmatpush1.msra.mxu1 %v1085_v4  ;;  %1342 = vmatpush1.msra.mxu0 %v1149_v24  ;;  %v1189_v14 = vld [vmem:[#allocation5 + $0x1160] sm:$0xff]  ;;  %v1188_v16 = vld [vmem:[#allocation5 + $0x1148] sm:$0xff] }
 0x2ee   : > { %1230 = vmatprep.subr.mxu1 %v1084_v25  ;;  %1343 = vmatprep.subr.mxu0 %v1148_v26  ;;  %v1123_v17 = vld [vmem:[#allocation5 + $0xd40] sm:$0xff]  ;;  %v1122_v19 = vld [vmem:[#allocation5 + $0xd28] sm:$0xff] }
 0x2ef   : > { %1231 = vmatpush1.msra.mxu1 %v1083_v27  ;;  %1344 = vmatpush1.msra.mxu0 %v1147_v28  ;;  %v1187_v18 = vld [vmem:[#allocation5 + $0x1140] sm:$0xff]  ;;  %v1186_v20 = vld [vmem:[#allocation5 + $0x1128] sm:$0xff] }
 0x2f0   : > { %1232 = vmatprep.subr.mxu1 %v1082_v29  ;;  %1345 = vmatprep.subr.mxu0 %v1146_v30  ;;  %v1121_v21 = vld [vmem:[#allocation5 + $0xd20] sm:$0xff]  ;;  %v1120_v22 = vld [vmem:[#allocation5 + $0xd08] sm:$0xff] }
 0x2f1   : > { %1233 = vmatpush1.msra.mxu1 %v1081_v31  ;;  %1346 = vmatpush1.msra.mxu0 %v1145_v32  ;;  %v1185_v3 = vld [vmem:[#allocation5 + $0x1120] sm:$0xff]  ;;  %v1184_v23 = vld [vmem:[#allocation5 + $0x1108] sm:$0xff] }
 0x2f2   : > { %1234 = vmatprep.subr.mxu1 %v1080_v34  ;;  %1347 = vmatprep.subr.mxu0 %v1144_v35  ;;  %v1119_v33 = vld [vmem:[#allocation5 + $0xd00] sm:$0xff]  ;;  %v1118_v24 = vld [vmem:[#allocation5 + $0xce8] sm:$0xff] }
 0x2f3   : > { %1235 = vmatpush1.msra.mxu1 %v1079_v36  ;;  %1348 = vmatpush1.msra.mxu0 %v1143_v37  ;;  %v1183_v4 = vld [vmem:[#allocation5 + $0x1100] sm:$0xff]  ;;  %v1182_v25 = vld [vmem:[#allocation5 + $0x10e8] sm:$0xff] }
 0x2f4   : > { %1236 = vmatprep.subr.mxu1 %v1078_v38  ;;  %1349 = vmatprep.subr.mxu0 %v1142_v39  ;;  %v1117_v26 = vld [vmem:[#allocation5 + $0xce0] sm:$0xff]  ;;  %v1116_v28 = vld [vmem:[#allocation5 + $0xcc8] sm:$0xff] }
 0x2f5   : > { %1237 = vmatpush1.msra.mxu1 %v1077_v40  ;;  %1350 = vmatpush1.msra.mxu0 %v1141_v41  ;;  %v1181_v27 = vld [vmem:[#allocation5 + $0x10e0] sm:$0xff]  ;;  %v1180_v29 = vld [vmem:[#allocation5 + $0x10c8] sm:$0xff] }
 0x2f6   : > { %1238 = vmatprep.subr.mxu1 %v1076_v42  ;;  %1351 = vmatprep.subr.mxu0 %v1140_v43  ;;  %v1115_v30 = vld [vmem:[#allocation5 + $0xcc0] sm:$0xff]  ;;  %v1114_v32 = vld [vmem:[#allocation5 + $0xca8] sm:$0xff] }
 0x2f7   : > { %1239 = vmatpush1.msra.mxu1 %v1075_v44  ;;  %1352 = vmatpush1.msra.mxu0 %v1139_v45  ;;  %v1179_v31 = vld [vmem:[#allocation5 + $0x10c0] sm:$0xff]  ;;  %v1178_v34 = vld [vmem:[#allocation5 + $0x10a8] sm:$0xff] }
 0x2f8   : > { %1240 = vmatprep.subr.mxu1 %v1074_v46  ;;  %1353 = vmatprep.subr.mxu0 %v1138_v47  ;;  %v1113_v35 = vld [vmem:[#allocation5 + $0xca0] sm:$0xff]  ;;  %v1112_v37 = vld [vmem:[#allocation5 + $0xc88] sm:$0xff] }
 0x2f9   : > { %1241 = vmatpush1.msra.mxu1 %v1073_v48  ;;  %1354 = vmatpush1.msra.mxu0 %v1137_v49  ;;  %v1177_v36 = vld [vmem:[#allocation5 + $0x10a0] sm:$0xff]  ;;  %v1176_v38 = vld [vmem:[#allocation5 + $0x1088] sm:$0xff] }
 0x2fa   : > { %1242 = vmatprep.subr.mxu1 %v1072_v50  ;;  %1355 = vmatprep.subr.mxu0 %v1136_v51  ;;  %v1111_v39 = vld [vmem:[#allocation5 + $0xc80] sm:$0xff]  ;;  %v1110_v41 = vld [vmem:[#allocation5 + $0xc68] sm:$0xff] }
 0x2fb   : > { %1243 = vmatpush1.msra.mxu1 %v1071_v52  ;;  %1356 = vmatpush1.msra.mxu0 %v1135_v53  ;;  %v1175_v40 = vld [vmem:[#allocation5 + $0x1080] sm:$0xff]  ;;  %v1174_v42 = vld [vmem:[#allocation5 + $0x1068] sm:$0xff] }
 0x2fc   : > { %1244 = vmatprep.subr.mxu1 %v1134_v54  ;;  %1357 = vmatprep.subr.mxu0 %v1198_v55  ;;  %v1109_v43 = vld [vmem:[#allocation5 + $0xc60] sm:$0xff]  ;;  %v1108_v45 = vld [vmem:[#allocation5 + $0xc48] sm:$0xff] }
 0x2fd   : > { %1245 = vmatpush2.msra.mxu1 %v1133_v56  ;;  %1358 = vmatpush2.msra.mxu0 %v1197_v57  ;;  %v1173_v44 = vld [vmem:[#allocation5 + $0x1060] sm:$0xff]  ;;  %v1172_v46 = vld [vmem:[#allocation5 + $0x1048] sm:$0xff] }
 0x2fe   : > { %1246 = vmatprep.subr.mxu1 %v1132_v58  ;;  %1359 = vmatprep.subr.mxu0 %v1196_v59  ;;  %v1107_v47 = vld [vmem:[#allocation5 + $0xc40] sm:$0xff]  ;;  %v1106_v49 = vld [vmem:[#allocation5 + $0xc28] sm:$0xff]  ;;  %v803_v58 = vsub.s32 2, %v3134_v63 }
 0x2ff   : > { %1247 = vmatpush2.msra.mxu1 %v1131_v60  ;;  %1360 = vmatpush2.msra.mxu0 %v1195_v61  ;;  %v1171_v48 = vld [vmem:[#allocation5 + $0x1040] sm:$0xff]  ;;  %v1170_v50 = vld [vmem:[#allocation5 + $0x1028] sm:$0xff]  ;;  %v807_v60 = vsub.s32 3, %v3134_v63 }
 0x300   : > { %1248 = vmatprep.subr.mxu1 %v1130_v62  ;;  %1361 = vmatprep.subr.mxu0 %v1194_v1  ;;  %v1105_v51 = vld [vmem:[#allocation5 + $0xc20] sm:$0xff]  ;;  %v1104_v53 = vld [vmem:[#allocation5 + $0xc08] sm:$0xff] }
 0x301   : > { %1249 = vmatpush2.msra.mxu1 %v1129_v5  ;;  %1362 = vmatpush2.msra.mxu0 %v1193_v6  ;;  %v1169_v52 = vld [vmem:[#allocation5 + $0x1020] sm:$0xff]  ;;  %v1168_v54 = vld [vmem:[#allocation5 + $0x1008] sm:$0xff] }
 0x302   : > { %1250 = vmatprep.subr.mxu1 %v1128_v7  ;;  %1363 = vmatprep.subr.mxu0 %v1192_v8  ;;  %v1103_v55 = vld [vmem:[#allocation5 + $0xc00] sm:$0xff] }
 0x303   : > { %1251 = vmatpush2.msra.mxu1 %v1127_v9  ;;  %1364 = vmatpush2.msra.mxu0 %v1191_v10  ;;  %v1167_v56 = vld [vmem:[#allocation5 + $0x1000] sm:$0xff] }
 0x304   : > { %1252 = vmatprep.subr.mxu1 %v1126_v11  ;;  %1365 = vmatprep.subr.mxu0 %v1190_v12  ;;  %v1485_v57 = vld [vmem:[#allocation5 + $0x15e0] sm:$0xff] }
 0x305   : > { %1253 = vmatpush2.msra.mxu1 %v1125_v13  ;;  %1366 = vmatpush2.msra.mxu0 %v1189_v14  ;;  %v791_v59 = vld [vmem:[#allocation7 + $0x3] ss:$8 sm:$0xf] }
 0x306   : > { %1254 = vmatprep.subr.mxu1 %v1124_v15  ;;  %1367 = vmatprep.subr.mxu0 %v1188_v16  ;;  %v3167_v61 = vrot.slane %v791_v59, %v3137_v0  ;;  %v3169_v62 = vrot.slane %v791_v59, %v803_v58  ;;  %v3172_v1 = vrot.slane %v791_v59, %v3140_v2 }
 0x307   : > { %1255 = vmatpush2.msra.mxu1 %v1123_v17  ;;  %1368 = vmatpush2.msra.mxu0 %v1187_v18  ;;  %v3174_v5 = vrot.slane %v791_v59, %v807_v60 }
 0x308   : > { %1256 = vmatprep.subr.mxu1 %v1122_v19  ;;  %1369 = vmatprep.subr.mxu0 %v1186_v20 }
 0x309   : > { %1257 = vmatpush2.msra.mxu1 %v1121_v21  ;;  %1370 = vmatpush2.msra.mxu0 %v1185_v3 }
 0x30a   : > { %1258 = vmatprep.subr.mxu1 %v1120_v22  ;;  %1371 = vmatprep.subr.mxu0 %v1184_v23  ;;  %v1469_v22 = vld [vmem:[#allocation5 + $0x13e0] sm:$0xff] }
 0x30b   : > { %1259 = vmatpush2.msra.mxu1 %v1119_v33  ;;  %1372 = vmatpush2.msra.mxu0 %v1183_v4  ;;  %v1484_v4 = vld [vmem:[#allocation5 + $0x15c0] sm:$0xff] }
 0x30c   : > { %1260 = vmatprep.subr.mxu1 %v1118_v24  ;;  %1373 = vmatprep.subr.mxu0 %v1182_v25 }
 0x30d   : > { %1261 = vmatpush2.msra.mxu1 %v1117_v26  ;;  %1374 = vmatpush2.msra.mxu0 %v1181_v27 }
 0x30e   : > { %1262 = vmatprep.subr.mxu1 %v1116_v28  ;;  %1375 = vmatprep.subr.mxu0 %v1180_v29 }
 0x30f   : > { %1263 = vmatpush2.msra.mxu1 %v1115_v30  ;;  %1376 = vmatpush2.msra.mxu0 %v1179_v31 }
 0x310   : > { %1264 = vmatprep.subr.mxu1 %v1114_v32  ;;  %1377 = vmatprep.subr.mxu0 %v1178_v34 }
 0x311   : > { %1265 = vmatpush2.msra.mxu1 %v1113_v35  ;;  %1378 = vmatpush2.msra.mxu0 %v1177_v36  ;;  %v1468_v35 = vld [vmem:[#allocation5 + $0x13c0] sm:$0xff] }
 0x312   : > { %1266 = vmatprep.subr.mxu1 %v1112_v37  ;;  %1379 = vmatprep.subr.mxu0 %v1176_v38  ;;  %v1483_v38 = vld [vmem:[#allocation5 + $0x15a0] sm:$0xff] }
 0x313   : > { %1267 = vmatpush2.msra.mxu1 %v1111_v39  ;;  %1380 = vmatpush2.msra.mxu0 %v1175_v40 }
 0x314   : > { %1268 = vmatprep.subr.mxu1 %v1110_v41  ;;  %1381 = vmatprep.subr.mxu0 %v1174_v42 }
 0x315   : > { %1269 = vmatpush2.msra.mxu1 %v1109_v43  ;;  %1382 = vmatpush2.msra.mxu0 %v1173_v44 }
 0x316   : > { %1270 = vmatprep.subr.mxu1 %v1108_v45  ;;  %1383 = vmatprep.subr.mxu0 %v1172_v46 }
 0x317   : > { %1271 = vmatpush2.msra.mxu1 %v1107_v47  ;;  %1384 = vmatpush2.msra.mxu0 %v1171_v48 }
 0x318   : > { %1272 = vmatprep.subr.mxu1 %v1106_v49  ;;  %1385 = vmatprep.subr.mxu0 %v1170_v50  ;;  %v1467_v49 = vld [vmem:[#allocation5 + $0x13a0] sm:$0xff] }
 0x319   : > { %1273 = vmatpush2.msra.mxu1 %v1105_v51  ;;  %1386 = vmatpush2.msra.mxu0 %v1169_v52  ;;  %v1482_v52 = vld [vmem:[#allocation5 + $0x1580] sm:$0xff] }
 0x31a   : > { %1274 = vmatprep.subr.mxu1 %v1104_v53  ;;  %1387 = vmatprep.subr.mxu0 %v1168_v54 }
 0x31b   : > { %1275 = vmatpush2.msra.mxu1 %v1103_v55  ;;  %1388 = vmatpush2.msra.mxu0 %v1167_v56 }
 0x31c   : > { %2294 = vmatprep.subr.mxu1 %v1485_v57 }
 0x38e   : > { %v879_v6 = vpop.f32.mrf.mxu1  ;;  %v992_v7 = vpop.f32.mrf.mxu0 }
 0x38f   : > { %v880_v8 = vadd.f32 %v879_v6, %v3167_v61  ;;  %v993_v9 = vadd.f32 %v992_v7, %v3169_v62 }
 0x390   : > { %v881_v10 = vpop.f32.mrf.mxu1  ;;  %v994_v11 = vpop.f32.mrf.mxu0 }
 0x391   : > { %v882_v63 = vadd.f32 %v881_v10, %v3172_v1  ;;  %v995_v12 = vadd.f32 %v994_v11, %v3174_v5  ;;  %v1039_v17 = vmax.f32 %v880_v8, 0.0  ;;  %v1041_v18 = vmax.f32 %v993_v9, 0.0  ;;  %v1466_v8 = vld [vmem:[#allocation5 + $0x1380] sm:$0xff] }
 0x392   : > { %v885_v13 = vpop.f32.mrf.mxu1  ;;  %v998_v14 = vpop.f32.mrf.mxu0  ;;  %v1481_v11 = vld [vmem:[#allocation5 + $0x1560] sm:$0xff] }
 0x393   : > { %v1040_v15 = vmax.f32 %v882_v63, 0.0  ;;  %v1042_v16 = vmax.f32 %v995_v12, 0.0  ;;  %v886_v19 = vadd.f32 %v885_v13, %v3167_v61  ;;  %v999_v20 = vadd.f32 %v998_v14, %v3169_v62 }
 0x394   : > { %v887_v21 = vpop.f32.mrf.mxu1  ;;  %v1000_v3 = vpop.f32.mrf.mxu0 }
 0x395   : > { %v888_v23 = vadd.f32 %v887_v21, %v3172_v1  ;;  %v1001_v33 = vadd.f32 %v1000_v3, %v3174_v5  ;;  %1276 = vmatprep.mubr.f32.mxu1 %v1040_v15  ;;  %1389 = vmatprep.mubr.f32.mxu0 %v1042_v16  ;;  %v1043_v28 = vmax.f32 %v886_v19, 0.0  ;;  %v1045_v29 = vmax.f32 %v999_v20, 0.0  ;;  %v1465_v21 = vld [vmem:[#allocation5 + $0x1360] sm:$0xff] }
 0x396   : > { %v891_v24 = vpop.f32.mrf.mxu1  ;;  %v1004_v25 = vpop.f32.mrf.mxu0  ;;  %1277 = vmatmul.mubr.f32.vlgmr.msra.gmra.mxu1 %v1039_v17  ;;  %1390 = vmatmul.mubr.f32.vlgmr.msra.gmra.mxu0 %v1041_v18 }
 0x397   : > { %v1044_v26 = vmax.f32 %v888_v23, 0.0  ;;  %v1046_v27 = vmax.f32 %v1001_v33, 0.0  ;;  %2295 = vmatpush3.msra.mxu1 %v1469_v22  ;;  %v892_v30 = vadd.f32 %v891_v24, %v3167_v61  ;;  %v1005_v31 = vadd.f32 %v1004_v25, %v3169_v62  ;;  %v1480_v23 = vld [vmem:[#allocation5 + $0x1540] sm:$0xff] }
 0x398   : > { %v893_v32 = vpop.f32.mrf.mxu1  ;;  %v1006_v34 = vpop.f32.mrf.mxu0  ;;  %2296 = vmatprep.subr.mxu1 %v1484_v4 }
 0x399   : > { %v894_v36 = vadd.f32 %v893_v32, %v3172_v1  ;;  %v1007_v37 = vadd.f32 %v1006_v34, %v3174_v5  ;;  %1282 = vmatprep.mubr.f32.mxu1 %v1044_v26  ;;  %1395 = vmatprep.mubr.f32.mxu0 %v1046_v27  ;;  %v1047_v43 = vmax.f32 %v892_v30, 0.0  ;;  %v1049_v44 = vmax.f32 %v1005_v31, 0.0  ;;  %v1464_v32 = vld [vmem:[#allocation5 + $0x1340] sm:$0xff] }
 0x39a   : > { %v897_v39 = vpop.f32.mrf.mxu1  ;;  %v1010_v40 = vpop.f32.mrf.mxu0  ;;  %1283 = vmatmul.mubr.f32.gmra.mxu1 %v1043_v28  ;;  %1396 = vmatmul.mubr.f32.gmra.mxu0 %v1045_v29 }
 0x39b   : > { %v1048_v41 = vmax.f32 %v894_v36, 0.0  ;;  %v1050_v42 = vmax.f32 %v1007_v37, 0.0  ;;  %2297 = vmatpush3.msra.mxu1 %v1468_v35  ;;  %v898_v45 = vadd.f32 %v897_v39, %v3167_v61  ;;  %v1011_v46 = vadd.f32 %v1010_v40, %v3169_v62  ;;  %v1479_v36 = vld [vmem:[#allocation5 + $0x1520] sm:$0xff] }
 0x39c   : > { %v899_v47 = vpop.f32.mrf.mxu1  ;;  %v1012_v48 = vpop.f32.mrf.mxu0  ;;  %2298 = vmatprep.subr.mxu1 %v1483_v38 }
 0x39d   : > { %v900_v50 = vadd.f32 %v899_v47, %v3172_v1  ;;  %v1013_v51 = vadd.f32 %v1012_v48, %v3174_v5  ;;  %1288 = vmatprep.mubr.f32.mxu1 %v1048_v41  ;;  %1401 = vmatprep.mubr.f32.mxu0 %v1050_v42  ;;  %v1051_v57 = vmax.f32 %v898_v45, 0.0  ;;  %v1053_v58 = vmax.f32 %v1011_v46, 0.0  ;;  %v1463_v47 = vld [vmem:[#allocation5 + $0x1320] sm:$0xff] }
 0x39e   : > { %v903_v53 = vpop.f32.mrf.mxu1  ;;  %v1016_v54 = vpop.f32.mrf.mxu0  ;;  %1289 = vmatmul.mubr.f32.gmra.mxu1 %v1047_v43  ;;  %1402 = vmatmul.mubr.f32.gmra.mxu0 %v1049_v44 }
 0x39f   : > { %v1052_v55 = vmax.f32 %v900_v50, 0.0  ;;  %v1054_v56 = vmax.f32 %v1013_v51, 0.0  ;;  %2299 = vmatpush3.msra.mxu1 %v1467_v49  ;;  %v904_v59 = vadd.f32 %v903_v53, %v3167_v61  ;;  %v1017_v60 = vadd.f32 %v1016_v54, %v3169_v62  ;;  %v1478_v50 = vld [vmem:[#allocation5 + $0x1500] sm:$0xff] }
 0x3a0   : > { %v905_v6 = vpop.f32.mrf.mxu1  ;;  %v1018_v7 = vpop.f32.mrf.mxu0  ;;  %2300 = vmatprep.subr.mxu1 %v1482_v52  ;;  %v1477_v54 = vld [vmem:[#allocation5 + $0x14e0] sm:$0xff] }
 0x3a1   : > { %v906_v9 = vadd.f32 %v905_v6, %v3172_v1  ;;  %v1019_v10 = vadd.f32 %v1018_v7, %v3174_v5  ;;  %1294 = vmatprep.mubr.f32.mxu1 %v1052_v55  ;;  %1407 = vmatprep.mubr.f32.mxu0 %v1054_v56  ;;  %v1055_v15 = vmax.f32 %v904_v59, 0.0  ;;  %v1057_v16 = vmax.f32 %v1017_v60, 0.0  ;;  %v1460_v55 = vld [vmem:[#allocation5 + $0x12c0] sm:$0xff] }
 0x3a2   : > { %v909_v63 = vpop.f32.mrf.mxu1  ;;  %v1022_v12 = vpop.f32.mrf.mxu0  ;;  %1295 = vmatmul.mubr.f32.gmra.mxu1 %v1051_v57  ;;  %1408 = vmatmul.mubr.f32.gmra.mxu0 %v1053_v58  ;;  %v1475_v56 = vld [vmem:[#allocation5 + $0x14a0] sm:$0xff] }
 0x3a3   : > { %v1056_v13 = vmax.f32 %v906_v9, 0.0  ;;  %v1058_v14 = vmax.f32 %v1019_v10, 0.0  ;;  %2301 = vmatpush3.msra.mxu1 %v1466_v8  ;;  %v910_v17 = vadd.f32 %v909_v63, %v3167_v61  ;;  %v1023_v18 = vadd.f32 %v1022_v12, %v3169_v62  ;;  %v1459_v57 = vld [vmem:[#allocation5 + $0x12a0] sm:$0xff] }
 0x3a4   : > { %v911_v19 = vpop.f32.mrf.mxu1  ;;  %v1024_v20 = vpop.f32.mrf.mxu0  ;;  %2302 = vmatprep.subr.mxu1 %v1481_v11  ;;  %v1474_v58 = vld [vmem:[#allocation5 + $0x1480] sm:$0xff] }
 0x3a5   : > { %v912_v3 = vadd.f32 %v911_v19, %v3172_v1  ;;  %v1025_v22 = vadd.f32 %v1024_v20, %v3174_v5  ;;  %1300 = vmatprep.mubr.f32.mxu1 %v1056_v13  ;;  %1413 = vmatprep.mubr.f32.mxu0 %v1058_v14  ;;  %v1059_v26 = vmax.f32 %v910_v17, 0.0  ;;  %v1061_v27 = vmax.f32 %v1023_v18, 0.0  ;;  %v1458_v59 = vld [vmem:[#allocation5 + $0x1280] sm:$0xff] }
 0x3a6   : > { %v915_v33 = vpop.f32.mrf.mxu1  ;;  %v1028_v4 = vpop.f32.mrf.mxu0  ;;  %1301 = vmatmul.mubr.f32.gmra.mxu1 %v1055_v15  ;;  %1414 = vmatmul.mubr.f32.gmra.mxu0 %v1057_v16  ;;  %v1473_v60 = vld [vmem:[#allocation5 + $0x1460] sm:$0xff] }
 0x3a7   : > { %v1060_v24 = vmax.f32 %v912_v3, 0.0  ;;  %v1062_v25 = vmax.f32 %v1025_v22, 0.0  ;;  %2303 = vmatpush3.msra.mxu1 %v1465_v21  ;;  %v916_v28 = vadd.f32 %v915_v33, %v3167_v61  ;;  %v1029_v29 = vadd.f32 %v1028_v4, %v3169_v62  ;;  %v1457_v6 = vld [vmem:[#allocation5 + $0x1260] sm:$0xff] }
 0x3a8   : > { %v917_v30 = vpop.f32.mrf.mxu1  ;;  %v1030_v31 = vpop.f32.mrf.mxu0  ;;  %2304 = vmatprep.subr.mxu1 %v1480_v23  ;;  %v1472_v7 = vld [vmem:[#allocation5 + $0x1440] sm:$0xff] }
 0x3a9   : > { %v918_v34 = vadd.f32 %v917_v30, %v3172_v1  ;;  %v1031_v35 = vadd.f32 %v1030_v31, %v3174_v5  ;;  %1306 = vmatprep.mubr.f32.mxu1 %v1060_v24  ;;  %1419 = vmatprep.mubr.f32.mxu0 %v1062_v25  ;;  %v1063_v41 = vmax.f32 %v916_v28, 0.0  ;;  %v1065_v42 = vmax.f32 %v1029_v29, 0.0  ;;  %v1456_v8 = vld [vmem:[#allocation5 + $0x1240] sm:$0xff] }
 0x3aa   : > { %v921_v37 = vpop.f32.mrf.mxu1  ;;  %v1034_v38 = vpop.f32.mrf.mxu0  ;;  %1307 = vmatmul.mubr.f32.gmra.mxu1 %v1059_v26  ;;  %1420 = vmatmul.mubr.f32.gmra.mxu0 %v1061_v27  ;;  %v1471_v9 = vld [vmem:[#allocation5 + $0x1420] sm:$0xff] }
 0x3ab   : > { %v1064_v39 = vmax.f32 %v918_v34, 0.0  ;;  %v1066_v40 = vmax.f32 %v1031_v35, 0.0  ;;  %2305 = vmatpush3.msra.mxu1 %v1464_v32  ;;  %v922_v43 = vadd.f32 %v921_v37, %v3167_v61  ;;  %v1035_v44 = vadd.f32 %v1034_v38, %v3169_v62  ;;  %v1462_v62 = vld [vmem:[#allocation5 + $0x1300] sm:$0xff] }
 0x3ac   : > { %v923_v45 = vpop.f32.mrf.mxu1  ;;  %v1036_v46 = vpop.f32.mrf.mxu0  ;;  %2306 = vmatprep.subr.mxu1 %v1479_v36  ;;  %v1455_v10 = vld [vmem:[#allocation5 + $0x1220] sm:$0xff] }
 0x3ad   : > { %v924_v48 = vadd.f32 %v923_v45, %v3172_v1  ;;  %v1037_v49 = vadd.f32 %v1036_v46, %v3174_v5  ;;  %1312 = vmatprep.mubr.f32.mxu1 %v1064_v39  ;;  %1425 = vmatprep.mubr.f32.mxu0 %v1066_v40  ;;  %v1067_v53 = vmax.f32 %v922_v43, 0.0  ;;  %v1069_v61 = vmax.f32 %v1035_v44, 0.0  ;;  %v1461_v1 = vld [vmem:[#allocation5 + $0x12e0] sm:$0xff] }
 0x3ae   : > { %1313 = vmatmul.mubr.f32.gmra.mxu1 %v1063_v41  ;;  %1426 = vmatmul.mubr.f32.gmra.mxu0 %v1065_v42  ;;  %v1476_v5 = vld [vmem:[#allocation5 + $0x14c0] sm:$0xff] }
 0x3af   : > { %v1068_v51 = vmax.f32 %v924_v48, 0.0  ;;  %v1070_v52 = vmax.f32 %v1037_v49, 0.0  ;;  %2307 = vmatpush3.msra.mxu1 %v1463_v47  ;;  %v1470_v11 = vld [vmem:[#allocation5 + $0x1400] sm:$0xff] }
 0x3b0   : > { %2308 = vmatprep.subr.mxu1 %v1478_v50  ;;  %v1454_v63 = vld [vmem:[#allocation5 + $0x1200] sm:$0xff] }
 0x3b1   : > { %1318 = vmatprep.mubr.f32.mxu1 %v1068_v51  ;;  %1431 = vmatprep.mubr.f32.mxu0 %v1070_v52  ;;  %v1615_v12 = vld [vmem:[#allocation5 + $0x17e0] sm:$0xff] }
 0x3b2   : > { %1319 = vmatmul.mubr.f32.gmra.mxu1 %v1067_v53  ;;  %1432 = vmatmul.mubr.f32.gmra.mxu0 %v1069_v61  ;;  %v1614_v13 = vld [vmem:[#allocation5 + $0x17c0] sm:$0xff] }
 0x3b3   : > { %2309 = vmatpush3.msra.mxu1 %v1462_v62  ;;  %2534 = vmatprep.subr.mxu0 %v1615_v12  ;;  %v1613_v14 = vld [vmem:[#allocation5 + $0x17a0] sm:$0xff] }
 0x3b4   : > { %2310 = vmatprep.subr.mxu1 %v1477_v54  ;;  %2535 = vmatpush3.msra.mxu0 %v1615_v12  ;;  %v1612_v15 = vld [vmem:[#allocation5 + $0x1780] sm:$0xff] }
 0x3b5   : > { %2311 = vmatpush3.msra.mxu1 %v1461_v1  ;;  %2536 = vmatprep.subr.mxu0 %v1614_v13  ;;  %v1611_v16 = vld [vmem:[#allocation5 + $0x1760] sm:$0xff] }
 0x3b6   : > { %2312 = vmatprep.subr.mxu1 %v1476_v5  ;;  %2537 = vmatpush3.msra.mxu0 %v1614_v13  ;;  %v1610_v17 = vld [vmem:[#allocation5 + $0x1740] sm:$0xff] }
 0x3b7   : > { %2313 = vmatpush3.msra.mxu1 %v1460_v55  ;;  %2538 = vmatprep.subr.mxu0 %v1613_v14  ;;  %v1609_v18 = vld [vmem:[#allocation5 + $0x1720] sm:$0xff] }
 0x3b8   : > { %2314 = vmatprep.subr.mxu1 %v1475_v56  ;;  %2539 = vmatpush3.msra.mxu0 %v1613_v14  ;;  %v1608_v19 = vld [vmem:[#allocation5 + $0x1700] sm:$0xff] }
 0x3b9   : > { %2315 = vmatpush3.msra.mxu1 %v1459_v57  ;;  %2540 = vmatprep.subr.mxu0 %v1612_v15  ;;  %v1607_v20 = vld [vmem:[#allocation5 + $0x16e0] sm:$0xff] }
 0x3ba   : > { %2316 = vmatprep.subr.mxu1 %v1474_v58  ;;  %2541 = vmatpush3.msra.mxu0 %v1612_v15  ;;  %v1606_v21 = vld [vmem:[#allocation5 + $0x16c0] sm:$0xff] }
 0x3bb   : > { %2317 = vmatpush3.msra.mxu1 %v1458_v59  ;;  %2542 = vmatprep.subr.mxu0 %v1611_v16  ;;  %v1200_v3 = vld [vmem:[#allocation7 + $0x4] ss:$8 sm:$0x3] }
 0x3bc   : > { %2318 = vmatprep.subr.mxu1 %v1473_v60  ;;  %2543 = vmatpush3.msra.mxu0 %v1611_v16  ;;  %v3209_v22 = vrot.slane %v1200_v3, %v3137_v0  ;;  %v3212_v23 = vrot.slane %v1200_v3, %v3140_v2 }
 0x3bd   : > { %2319 = vmatpush3.msra.mxu1 %v1457_v6  ;;  %2544 = vmatprep.subr.mxu0 %v1610_v17 }
 0x3be   : > { %2320 = vmatprep.subr.mxu1 %v1472_v7  ;;  %2545 = vmatpush3.msra.mxu0 %v1610_v17 }
 0x3bf   : > { %2321 = vmatpush3.msra.mxu1 %v1456_v8  ;;  %2546 = vmatprep.subr.mxu0 %v1609_v18 }
 0x3c0   : > { %2322 = vmatprep.subr.mxu1 %v1471_v9  ;;  %2547 = vmatpush3.msra.mxu0 %v1609_v18 }
 0x3c1   : > { %2323 = vmatpush3.msra.mxu1 %v1455_v10  ;;  %2548 = vmatprep.subr.mxu0 %v1608_v19 }
 0x3c2   : > { %2324 = vmatprep.subr.mxu1 %v1470_v11  ;;  %2549 = vmatpush3.msra.mxu0 %v1608_v19 }
 0x3c3   : > { %2325 = vmatpush3.msra.mxu1 %v1454_v63  ;;  %2550 = vmatprep.subr.mxu0 %v1607_v20 }
 0x3c4   : > { %2551 = vmatpush3.msra.mxu0 %v1607_v20 }
 0x3c5   : > { %2552 = vmatprep.subr.mxu0 %v1606_v21 }
 0x3c6   : > { %2553 = vmatpush3.msra.mxu0 %v1606_v21 }
 0x456   : > { %v1278_v33 = vpop.f32.mrf.mxu1  ;;  %v1391_v4 = vpop.f32.mrf.mxu0 }
 0x457   : > { %v1279_v24 = vadd.f32 %v1278_v33, %v3209_v22 }
 0x458   : > { %v1280_v25 = vpop.f32.mrf.mxu1  ;;  %v1393_v26 = vpop.f32.mrf.mxu0 }
 0x459   : > { %v1281_v27 = vadd.f32 %v1280_v25, %v3212_v23  ;;  %v1392_v28 = vadd.f32 %v1391_v4, %v1279_v24 }
 0x45a   : > { %v1284_v29 = vpop.f32.mrf.mxu1  ;;  %v1397_v30 = vpop.f32.mrf.mxu0 }
 0x45b   : > { %v1394_v31 = vadd.f32 %v1393_v26, %v1281_v27  ;;  %v1285_v32 = vadd.f32 %v1284_v29, %v3209_v22  ;;  %v1438_v36 = vmax.f32 %v1392_v28, 0.0 }
 0x45c   : > { %v1286_v34 = vpop.f32.mrf.mxu1  ;;  %v1399_v0 = vpop.f32.mrf.mxu0 }
 0x45d   : > { %v1439_v35 = vmax.f32 %v1394_v31, 0.0  ;;  %v1287_v2 = vadd.f32 %v1286_v34, %v3212_v23  ;;  %v1398_v37 = vadd.f32 %v1397_v30, %v1285_v32 }
 0x45e   : > { %v1290_v38 = vpop.f32.mrf.mxu1  ;;  %v1403_v39 = vpop.f32.mrf.mxu0 }
 0x45f   : > { %v1400_v40 = vadd.f32 %v1399_v0, %v1287_v2  ;;  %v1291_v41 = vadd.f32 %v1290_v38, %v3209_v22  ;;  %1551 = vmatprep.mubr.f32.mxu1 %v1439_v35  ;;  %v1440_v46 = vmax.f32 %v1398_v37, 0.0 }
 0x460   : > { %v1292_v42 = vpop.f32.mrf.mxu1  ;;  %v1405_v43 = vpop.f32.mrf.mxu0  ;;  %1552 = vmatmul.mubr.f32.vlgmr.msra.gmra.mxu1 %v1438_v36 }
 0x461   : > { %v1441_v44 = vmax.f32 %v1400_v40, 0.0  ;;  %v1293_v45 = vadd.f32 %v1292_v42, %v3212_v23  ;;  %v1404_v47 = vadd.f32 %v1403_v39, %v1291_v41  ;;  %v1605_v39 = vld [vmem:[#allocation5 + $0x16a0] sm:$0xff] }
 0x462   : > { %v1296_v48 = vpop.f32.mrf.mxu1  ;;  %v1409_v49 = vpop.f32.mrf.mxu0  ;;  %2554 = vmatprep.subr.mxu0 %v1605_v39  ;;  %v1603_v40 = vld [vmem:[#allocation5 + $0x1660] sm:$0xff] }
 0x463   : > { %v1406_v50 = vadd.f32 %v1405_v43, %v1293_v45  ;;  %v1297_v51 = vadd.f32 %v1296_v48, %v3209_v22  ;;  %1556 = vmatprep.mubr.f32.mxu1 %v1441_v44  ;;  %v1442_v54 = vmax.f32 %v1404_v47, 0.0  ;;  %2555 = vmatpush3.msra.mxu0 %v1605_v39  ;;  %v1601_v41 = vld [vmem:[#allocation5 + $0x1620] sm:$0xff] }
 0x464   : > { %v1298_v52 = vpop.f32.mrf.mxu1  ;;  %v1411_v53 = vpop.f32.mrf.mxu0  ;;  %1557 = vmatmul.mubr.f32.gmra.mxu1 %v1440_v46  ;;  %v1600_v42 = vld [vmem:[#allocation5 + $0x1600] sm:$0xff] }
 0x465   : > { %v1443_v61 = vmax.f32 %v1406_v50, 0.0  ;;  %v1299_v62 = vadd.f32 %v1298_v52, %v3212_v23  ;;  %v1410_v1 = vadd.f32 %v1409_v49, %v1297_v51  ;;  %v1745_v43 = vld [vmem:[#allocation5 + $0x19e0] sm:$0xff] }
 0x466   : > { %v1302_v5 = vpop.f32.mrf.mxu1  ;;  %v1415_v55 = vpop.f32.mrf.mxu0  ;;  %v1744_v44 = vld [vmem:[#allocation5 + $0x19c0] sm:$0xff]  ;;  %2578 = vmatprep.subr.mxu1 %v1745_v43 }
 0x467   : > { %v1412_v56 = vadd.f32 %v1411_v53, %v1299_v62  ;;  %v1303_v57 = vadd.f32 %v1302_v5, %v3209_v22  ;;  %1561 = vmatprep.mubr.f32.mxu1 %v1443_v61  ;;  %v1444_v7 = vmax.f32 %v1410_v1, 0.0  ;;  %2579 = vmatpush3.msra.mxu1 %v1745_v43  ;;  %v1743_v45 = vld [vmem:[#allocation5 + $0x19a0] sm:$0xff] }
 0x468   : > { %v1304_v58 = vpop.f32.mrf.mxu1  ;;  %v1417_v59 = vpop.f32.mrf.mxu0  ;;  %1562 = vmatmul.mubr.f32.gmra.mxu1 %v1442_v54  ;;  %2580 = vmatprep.subr.mxu1 %v1744_v44  ;;  %v1742_v46 = vld [vmem:[#allocation5 + $0x1980] sm:$0xff] }
 0x469   : > { %v1445_v60 = vmax.f32 %v1412_v56, 0.0  ;;  %v1305_v6 = vadd.f32 %v1304_v58, %v3212_v23  ;;  %v1416_v8 = vadd.f32 %v1415_v55, %v1303_v57  ;;  %2581 = vmatpush3.msra.mxu1 %v1744_v44  ;;  %v1741_v47 = vld [vmem:[#allocation5 + $0x1960] sm:$0xff] }
 0x46a   : > { %v1308_v9 = vpop.f32.mrf.mxu1  ;;  %v1421_v10 = vpop.f32.mrf.mxu0  ;;  %2582 = vmatprep.subr.mxu1 %v1743_v45  ;;  %v1740_v48 = vld [vmem:[#allocation5 + $0x1940] sm:$0xff] }
 0x46b   : > { %v1418_v11 = vadd.f32 %v1417_v59, %v1305_v6  ;;  %v1309_v63 = vadd.f32 %v1308_v9, %v3209_v22  ;;  %1566 = vmatprep.mubr.f32.mxu1 %v1445_v60  ;;  %v1446_v16 = vmax.f32 %v1416_v8, 0.0  ;;  %2583 = vmatpush3.msra.mxu1 %v1743_v45  ;;  %v1739_v49 = vld [vmem:[#allocation5 + $0x1920] sm:$0xff] }
 0x46c   : > { %v1310_v12 = vpop.f32.mrf.mxu1  ;;  %v1423_v13 = vpop.f32.mrf.mxu0  ;;  %1567 = vmatmul.mubr.f32.gmra.mxu1 %v1444_v7  ;;  %2584 = vmatprep.subr.mxu1 %v1742_v46  ;;  %v1738_v50 = vld [vmem:[#allocation5 + $0x1900] sm:$0xff] }
 0x46d   : > { %v1447_v14 = vmax.f32 %v1418_v11, 0.0  ;;  %v1311_v15 = vadd.f32 %v1310_v12, %v3212_v23  ;;  %v1422_v17 = vadd.f32 %v1421_v10, %v1309_v63  ;;  %2585 = vmatpush3.msra.mxu1 %v1742_v46  ;;  %v1737_v51 = vld [vmem:[#allocation5 + $0x18e0] sm:$0xff] }
 0x46e   : > { %v1314_v18 = vpop.f32.mrf.mxu1  ;;  %v1427_v19 = vpop.f32.mrf.mxu0  ;;  %2586 = vmatprep.subr.mxu1 %v1741_v47  ;;  %v1736_v52 = vld [vmem:[#allocation5 + $0x18c0] sm:$0xff] }
 0x46f   : > { %v1424_v20 = vadd.f32 %v1423_v13, %v1311_v15  ;;  %v1315_v21 = vadd.f32 %v1314_v18, %v3209_v22  ;;  %1571 = vmatprep.mubr.f32.mxu1 %v1447_v14  ;;  %v1448_v25 = vmax.f32 %v1422_v17, 0.0  ;;  %2587 = vmatpush3.msra.mxu1 %v1741_v47  ;;  %v1735_v53 = vld [vmem:[#allocation5 + $0x18a0] sm:$0xff] }
 0x470   : > { %v1316_v3 = vpop.f32.mrf.mxu1  ;;  %v1429_v33 = vpop.f32.mrf.mxu0  ;;  %1572 = vmatmul.mubr.f32.gmra.mxu1 %v1446_v16  ;;  %2588 = vmatprep.subr.mxu1 %v1740_v48  ;;  %v1734_v61 = vld [vmem:[#allocation5 + $0x1880] sm:$0xff] }
 0x471   : > { %v1449_v4 = vmax.f32 %v1424_v20, 0.0  ;;  %v1317_v24 = vadd.f32 %v1316_v3, %v3212_v23  ;;  %v1428_v26 = vadd.f32 %v1427_v19, %v1315_v21  ;;  %2589 = vmatpush3.msra.mxu1 %v1740_v48  ;;  %v1486_v54 = vld [vmem:[#allocation7 + $0x5] ss:$0 sm:$0xff]  ;;  %v1616_v48 = vld [vmem:[#allocation7 + $0x6] ss:$0 sm:$0xff] }
 0x472   : > { %v1320_v27 = vpop.f32.mrf.mxu1  ;;  %v1433_v28 = vpop.f32.mrf.mxu0  ;;  %2590 = vmatprep.subr.mxu1 %v1739_v49  ;;  %v1874_v39 = vld [vmem:[#allocation5 + $0x1bc0] sm:$0xff] }
 0x473   : > { %v1430_v29 = vadd.f32 %v1429_v33, %v1317_v24  ;;  %v1321_v30 = vadd.f32 %v1320_v27, %v3209_v22  ;;  %1576 = vmatprep.mubr.f32.mxu1 %v1449_v4  ;;  %v1450_v0 = vmax.f32 %v1428_v26, 0.0  ;;  %v1604_v22 = vld [vmem:[#allocation5 + $0x1680] sm:$0xff]  ;;  %2591 = vmatpush3.msra.mxu1 %v1739_v49 }
 0x474   : > { %v1322_v31 = vpop.f32.mrf.mxu1  ;;  %1577 = vmatmul.mubr.f32.gmra.mxu1 %v1448_v25  ;;  %v1435_v2 = vpop.f32.mrf.mxu0  ;;  %2556 = vmatprep.subr.mxu0 %v1604_v22  ;;  %v1868_v43 = vld [vmem:[#allocation5 + $0x1b00] sm:$0xff] }
 0x475   : > { %v1451_v32 = vmax.f32 %v1430_v29, 0.0  ;;  %v1323_v34 = vadd.f32 %v1322_v31, %v3212_v23  ;;  %v1434_v35 = vadd.f32 %v1433_v28, %v1321_v30  ;;  %2557 = vmatpush3.msra.mxu0 %v1604_v22  ;;  %v1602_v23 = vld [vmem:[#allocation5 + $0x1640] sm:$0xff]  ;;  %2592 = vmatprep.subr.mxu1 %v1738_v50 }
 0x476   : > { %2558 = vmatprep.subr.mxu0 %v1603_v40  ;;  %2593 = vmatpush3.msra.mxu1 %v1738_v50  ;;  %v1873_v22 = vld [vmem:[#allocation5 + $0x1ba0] sm:$0xff] }
 0x477   : > { %v1436_v36 = vadd.f32 %v1435_v2, %v1323_v34  ;;  %1581 = vmatprep.mubr.f32.mxu1 %v1451_v32  ;;  %v1452_v38 = vmax.f32 %v1434_v35, 0.0  ;;  %2559 = vmatpush3.msra.mxu0 %v1603_v40  ;;  %v1733_v35 = vld [vmem:[#allocation5 + $0x1860] sm:$0xff] }
 0x478   : > { %1582 = vmatmul.mubr.f32.gmra.mxu1 %v1450_v0  ;;  %2560 = vmatprep.subr.mxu0 %v1602_v23  ;;  %v1732_v2 = vld [vmem:[#allocation5 + $0x1840] sm:$0xff] }
 0x479   : > { %v1453_v37 = vmax.f32 %v1436_v36, 0.0  ;;  %2561 = vmatpush3.msra.mxu0 %v1602_v23  ;;  %2594 = vmatprep.subr.mxu1 %v1737_v51  ;;  %v1731_v36 = vld [vmem:[#allocation5 + $0x1820] sm:$0xff] }
 0x47a   : > { %2562 = vmatprep.subr.mxu0 %v1601_v41  ;;  %2595 = vmatpush3.msra.mxu1 %v1737_v51  ;;  %v1872_v40 = vld [vmem:[#allocation5 + $0x1b80] sm:$0xff] }
 0x47b   : > { %1586 = vmatprep.mubr.f32.mxu1 %v1453_v37  ;;  %2563 = vmatpush3.msra.mxu0 %v1601_v41  ;;  %v1730_v37 = vld [vmem:[#allocation5 + $0x1800] sm:$0xff] }
 0x47c   : > { %1587 = vmatmul.mubr.f32.gmra.mxu1 %v1452_v38  ;;  %2564 = vmatprep.subr.mxu0 %v1600_v42  ;;  %v1875_v38 = vld [vmem:[#allocation5 + $0x1be0] sm:$0xff] }
 0x47d   : > { %2565 = vmatpush3.msra.mxu0 %v1600_v42  ;;  %2596 = vmatprep.subr.mxu1 %v1736_v52  ;;  %v1871_v23 = vld [vmem:[#allocation5 + $0x1b60] sm:$0xff] }
 0x47e   : > { %2597 = vmatpush3.msra.mxu1 %v1736_v52  ;;  %2622 = vmatprep.subr.mxu0 %v1875_v38  ;;  %v1870_v41 = vld [vmem:[#allocation5 + $0x1b40] sm:$0xff] }
 0x47f   : > { %2598 = vmatprep.subr.mxu1 %v1735_v53  ;;  %v1869_v42 = vld [vmem:[#allocation5 + $0x1b20] sm:$0xff] }
 0x480   : > { %2599 = vmatpush3.msra.mxu1 %v1735_v53  ;;  %v1867_v44 = vld [vmem:[#allocation5 + $0x1ae0] sm:$0xff] }
 0x481   : > { %2600 = vmatprep.subr.mxu1 %v1734_v61  ;;  %v1866_v45 = vld [vmem:[#allocation5 + $0x1ac0] sm:$0xff] }
 0x482   : > { %2601 = vmatpush3.msra.mxu1 %v1734_v61  ;;  %v1865_v46 = vld [vmem:[#allocation5 + $0x1aa0] sm:$0xff] }
 0x483   : > { %2602 = vmatprep.subr.mxu1 %v1733_v35  ;;  %v1864_v47 = vld [vmem:[#allocation5 + $0x1a80] sm:$0xff] }
 0x484   : > { %2603 = vmatpush3.msra.mxu1 %v1733_v35 }
 0x485   : > { %2604 = vmatprep.subr.mxu1 %v1732_v2 }
 0x486   : > { %2605 = vmatpush3.msra.mxu1 %v1732_v2 }
 0x487   : > { %2606 = vmatprep.subr.mxu1 %v1731_v36 }
 0x488   : > { %2607 = vmatpush3.msra.mxu1 %v1731_v36 }
 0x489   : > { %2608 = vmatprep.subr.mxu1 %v1730_v37 }
 0x48a   : > { %2609 = vmatpush3.msra.mxu1 %v1730_v37 }
 0x520   : > { %v2326_v62 = vpop.f32.mrf.mxu1 }
 0x522   : > { %v2327_v1 = vpop.f32.mrf.mxu1 }
 0x523   : > { %v2328_v5 = vadd.f32 %v2327_v1, %v2326_v62 }
 0x524   : > { %v2329_v55 = vpop.f32.mrf.mxu1 }
 0x525   : > { %v1554_v56 = vadd.f32 %v2328_v5, %v1486_v54 }
 0x526   : > { %v2330_v57 = vpop.f32.mrf.mxu1 }
 0x527   : > { %v1592_v58 = vmax.f32 %v1554_v56, 0.0  ;;  %v2331_v59 = vadd.f32 %v2330_v57, %v2329_v55 }
 0x528   : > { %v2332_v60 = vpop.f32.mrf.mxu1 }
 0x529   : > { %v1559_v6 = vadd.f32 %v2331_v59, %v1486_v54  ;;  %2566 = vmatprep.mubr.f32.mxu0 %v1592_v58 }
 0x52a   : > { %v2333_v7 = vpop.f32.mrf.mxu1 }
 0x52b   : > { %v1593_v8 = vmax.f32 %v1559_v6, 0.0  ;;  %v2334_v9 = vadd.f32 %v2333_v7, %v2332_v60 }
 0x52c   : > { %v2335_v10 = vpop.f32.mrf.mxu1 }
 0x52d   : > { %v1564_v11 = vadd.f32 %v2334_v9, %v1486_v54  ;;  %2567 = vmatmul.mubr.f32.vlgmr.msra.gmra.mxu0 %v1593_v8 }
 0x52e   : > { %v2336_v63 = vpop.f32.mrf.mxu1  ;;  %2623 = vmatpush3.msra.mxu0 %v1875_v38 }
 0x52f   : > { %v1594_v12 = vmax.f32 %v1564_v11, 0.0  ;;  %v2337_v13 = vadd.f32 %v2336_v63, %v2335_v10  ;;  %2624 = vmatprep.subr.mxu0 %v1874_v39 }
 0x530   : > { %v2338_v14 = vpop.f32.mrf.mxu1  ;;  %2625 = vmatpush3.msra.mxu0 %v1874_v39 }
 0x531   : > { %v1569_v15 = vadd.f32 %v2337_v13, %v1486_v54  ;;  %2569 = vmatprep.mubr.f32.mxu0 %v1594_v12  ;;  %2626 = vmatprep.subr.mxu0 %v1873_v22  ;;  %v1863_v13 = vld [vmem:[#allocation5 + $0x1a60] sm:$0xff] }
 0x532   : > { %v2339_v16 = vpop.f32.mrf.mxu1  ;;  %2627 = vmatpush3.msra.mxu0 %v1873_v22 }
 0x533   : > { %v1595_v17 = vmax.f32 %v1569_v15, 0.0  ;;  %v2340_v18 = vadd.f32 %v2339_v16, %v2338_v14  ;;  %2628 = vmatprep.subr.mxu0 %v1872_v40  ;;  %v1862_v14 = vld [vmem:[#allocation5 + $0x1a40] sm:$0xff] }
 0x534   : > { %v2341_v19 = vpop.f32.mrf.mxu1  ;;  %2629 = vmatpush3.msra.mxu0 %v1872_v40  ;;  %v1861_v15 = vld [vmem:[#allocation5 + $0x1a20] sm:$0xff] }
 0x535   : > { %v1574_v20 = vadd.f32 %v2340_v18, %v1486_v54  ;;  %2570 = vmatmul.mubr.f32.gmra.mxu0 %v1595_v17  ;;  %2630 = vmatprep.subr.mxu0 %v1871_v23  ;;  %v1860_v16 = vld [vmem:[#allocation5 + $0x1a00] sm:$0xff] }
 0x536   : > { %v2342_v21 = vpop.f32.mrf.mxu1  ;;  %2631 = vmatpush3.msra.mxu0 %v1871_v23  ;;  %v2005_v17 = vld [vmem:[#allocation5 + $0x1de0] sm:$0xff] }
 0x537   : > { %v1596_v3 = vmax.f32 %v1574_v20, 0.0  ;;  %v2343_v33 = vadd.f32 %v2342_v21, %v2341_v19  ;;  %2632 = vmatprep.subr.mxu0 %v1870_v41  ;;  %v2004_v18 = vld [vmem:[#allocation5 + $0x1dc0] sm:$0xff]  ;;  %2666 = vmatprep.subr.mxu1 %v2005_v17 }
 0x538   : > { %v2344_v4 = vpop.f32.mrf.mxu1  ;;  %2633 = vmatpush3.msra.mxu0 %v1870_v41  ;;  %v2003_v19 = vld [vmem:[#allocation5 + $0x1da0] sm:$0xff] }
 0x539   : > { %v1579_v24 = vadd.f32 %v2343_v33, %v1486_v54  ;;  %2572 = vmatprep.mubr.f32.mxu0 %v1596_v3  ;;  %2634 = vmatprep.subr.mxu0 %v1869_v42  ;;  %v2002_v20 = vld [vmem:[#allocation5 + $0x1d80] sm:$0xff] }
 0x53a   : > { %v2345_v25 = vpop.f32.mrf.mxu1  ;;  %2635 = vmatpush3.msra.mxu0 %v1869_v42  ;;  %v2001_v21 = vld [vmem:[#allocation5 + $0x1d60] sm:$0xff] }
 0x53b   : > { %v1597_v26 = vmax.f32 %v1579_v24, 0.0  ;;  %v2346_v27 = vadd.f32 %v2345_v25, %v2344_v4  ;;  %2636 = vmatprep.subr.mxu0 %v1868_v43  ;;  %v2000_v3 = vld [vmem:[#allocation5 + $0x1d40] sm:$0xff] }
 0x53c   : > { %v2347_v28 = vpop.f32.mrf.mxu1  ;;  %2637 = vmatpush3.msra.mxu0 %v1868_v43  ;;  %v1999_v33 = vld [vmem:[#allocation5 + $0x1d20] sm:$0xff] }
 0x53d   : > { %v1584_v29 = vadd.f32 %v2346_v27, %v1486_v54  ;;  %2573 = vmatmul.mubr.f32.gmra.mxu0 %v1597_v26  ;;  %2638 = vmatprep.subr.mxu0 %v1867_v44  ;;  %v1998_v4 = vld [vmem:[#allocation5 + $0x1d00] sm:$0xff] }
 0x53e   : > { %v2348_v30 = vpop.f32.mrf.mxu1  ;;  %2639 = vmatpush3.msra.mxu0 %v1867_v44  ;;  %v1997_v24 = vld [vmem:[#allocation5 + $0x1ce0] sm:$0xff] }
 0x53f   : > { %v1598_v31 = vmax.f32 %v1584_v29, 0.0  ;;  %v2349_v32 = vadd.f32 %v2348_v30, %v2347_v28  ;;  %2640 = vmatprep.subr.mxu0 %v1866_v45  ;;  %v1996_v25 = vld [vmem:[#allocation5 + $0x1cc0] sm:$0xff] }
 0x540   : > { %2641 = vmatpush3.msra.mxu0 %v1866_v45  ;;  %v1995_v26 = vld [vmem:[#allocation5 + $0x1ca0] sm:$0xff] }
 0x541   : > { %v1589_v34 = vadd.f32 %v2349_v32, %v1486_v54  ;;  %2575 = vmatprep.mubr.f32.mxu0 %v1598_v31  ;;  %2642 = vmatprep.subr.mxu0 %v1865_v46  ;;  %v1994_v27 = vld [vmem:[#allocation5 + $0x1c80] sm:$0xff] }
 0x542   : > { %2643 = vmatpush3.msra.mxu0 %v1865_v46  ;;  %v1746_v28 = vld [vmem:[#allocation7 + $0x7] ss:$0 sm:$0xff] }
 0x543   : > { %v1599_v0 = vmax.f32 %v1589_v34, 0.0  ;;  %2644 = vmatprep.subr.mxu0 %v1864_v47 }
 0x544   : > { %2645 = vmatpush3.msra.mxu0 %v1864_v47 }
 0x545   : > { %2576 = vmatmul.mubr.f32.gmra.mxu0 %v1599_v0  ;;  %2646 = vmatprep.subr.mxu0 %v1863_v13 }
 0x546   : > { %2647 = vmatpush3.msra.mxu0 %v1863_v13 }
 0x547   : > { %2648 = vmatprep.subr.mxu0 %v1862_v14 }
 0x548   : > { %2649 = vmatpush3.msra.mxu0 %v1862_v14 }
 0x549   : > { %2650 = vmatprep.subr.mxu0 %v1861_v15 }
 0x54a   : > { %2651 = vmatpush3.msra.mxu0 %v1861_v15 }
 0x54b   : > { %2652 = vmatprep.subr.mxu0 %v1860_v16 }
 0x54c   : > { %2653 = vmatpush3.msra.mxu0 %v1860_v16 }
 0x5ed   : > { %v2568_v49 = vpop.f32.mrf.mxu0 }
 0x5ee   : > { %v1689_v50 = vadd.f32 %v2568_v49, %v1616_v48 }
 0x5ef   : > { %v1683_v51 = vpop.f32.mrf.mxu0 }
 0x5f0   : > { %v1684_v52 = vadd.f32 %v1683_v51, %v1616_v48  ;;  %v1723_v61 = vmax.f32 %v1689_v50, 0.0  ;;  %v1993_v50 = vld [vmem:[#allocation5 + $0x1c60] sm:$0xff] }
 0x5f1   : > { %v1992_v51 = vld [vmem:[#allocation5 + $0x1c40] sm:$0xff] }
 0x5f2   : > { %v1722_v53 = vmax.f32 %v1684_v52, 0.0  ;;  %v1991_v52 = vld [vmem:[#allocation5 + $0x1c20] sm:$0xff] }
 0x5f4   : > { %2610 = vmatprep.mubr.f32.mxu1 %v1722_v53  ;;  %v1990_v53 = vld [vmem:[#allocation5 + $0x1c00] sm:$0xff] }
 0x5f5   : > { %v2571_v62 = vpop.f32.mrf.mxu0  ;;  %2611 = vmatmul.mubr.f32.vlgmr.msra.gmra.mxu1 %v1723_v61  ;;  %v1876_v61 = vld [vmem:[#allocation7 + $0x20] ss:$0 sm:$0xff] }
 0x5f6   : > { %v1699_v54 = vadd.f32 %v2571_v62, %v1616_v48  ;;  %2667 = vmatpush3.msra.mxu1 %v2005_v17 }
 0x5f7   : > { %v1693_v1 = vpop.f32.mrf.mxu0  ;;  %2668 = vmatprep.subr.mxu1 %v2004_v18 }
 0x5f8   : > { %v1694_v5 = vadd.f32 %v1693_v1, %v1616_v48  ;;  %v1725_v56 = vmax.f32 %v1699_v54, 0.0  ;;  %2669 = vmatpush3.msra.mxu1 %v2004_v18 }
 0x5f9   : > { %2670 = vmatprep.subr.mxu1 %v2003_v19 }
 0x5fa   : > { %v1724_v55 = vmax.f32 %v1694_v5, 0.0  ;;  %2671 = vmatpush3.msra.mxu1 %v2003_v19  ;;  %v2006_v19 = vld [vmem:[#allocation7 + $0x21] ss:$0 sm:$0xff] }
 0x5fb   : > { %2672 = vmatprep.subr.mxu1 %v2002_v20 }
 0x5fc   : > { %2613 = vmatprep.mubr.f32.mxu1 %v1724_v55  ;;  %2673 = vmatpush3.msra.mxu1 %v2002_v20 }
 0x5fd   : > { %v2574_v57 = vpop.f32.mrf.mxu0  ;;  %2614 = vmatmul.mubr.f32.gmra.mxu1 %v1725_v56  ;;  %2674 = vmatprep.subr.mxu1 %v2001_v21 }
 0x5fe   : > { %v1709_v58 = vadd.f32 %v2574_v57, %v1616_v48  ;;  %2675 = vmatpush3.msra.mxu1 %v2001_v21 }
 0x5ff   : > { %v1703_v59 = vpop.f32.mrf.mxu0  ;;  %2676 = vmatprep.subr.mxu1 %v2000_v3 }
 0x600   : > { %v1704_v60 = vadd.f32 %v1703_v59, %v1616_v48  ;;  %v1727_v7 = vmax.f32 %v1709_v58, 0.0  ;;  %2677 = vmatpush3.msra.mxu1 %v2000_v3 }
 0x601   : > { %2678 = vmatprep.subr.mxu1 %v1999_v33 }
 0x602   : > { %v1726_v6 = vmax.f32 %v1704_v60, 0.0  ;;  %2679 = vmatpush3.msra.mxu1 %v1999_v33 }
 0x603   : > { %2680 = vmatprep.subr.mxu1 %v1998_v4 }
 0x604   : > { %2616 = vmatprep.mubr.f32.mxu1 %v1726_v6  ;;  %2681 = vmatpush3.msra.mxu1 %v1998_v4 }
 0x605   : > { %v2577_v8 = vpop.f32.mrf.mxu0  ;;  %2617 = vmatmul.mubr.f32.gmra.mxu1 %v1727_v7  ;;  %2682 = vmatprep.subr.mxu1 %v1997_v24 }
 0x606   : > { %v1719_v9 = vadd.f32 %v2577_v8, %v1616_v48  ;;  %2683 = vmatpush3.msra.mxu1 %v1997_v24 }
 0x607   : > { %v1713_v10 = vpop.f32.mrf.mxu0  ;;  %2684 = vmatprep.subr.mxu1 %v1996_v25 }
 0x608   : > { %v1714_v11 = vadd.f32 %v1713_v10, %v1616_v48  ;;  %v1729_v12 = vmax.f32 %v1719_v9, 0.0  ;;  %2685 = vmatpush3.msra.mxu1 %v1996_v25 }
 0x609   : > { %2686 = vmatprep.subr.mxu1 %v1995_v26 }
 0x60a   : > { %v1728_v63 = vmax.f32 %v1714_v11, 0.0  ;;  %2687 = vmatpush3.msra.mxu1 %v1995_v26 }
 0x60b   : > { %2688 = vmatprep.subr.mxu1 %v1994_v27 }
 0x60c   : > { %2619 = vmatprep.mubr.f32.mxu1 %v1728_v63  ;;  %2689 = vmatpush3.msra.mxu1 %v1994_v27 }
 0x60d   : > { %2620 = vmatmul.mubr.f32.gmra.mxu1 %v1729_v12  ;;  %2690 = vmatprep.subr.mxu1 %v1993_v50 }
 0x60e   : > { %2691 = vmatpush3.msra.mxu1 %v1993_v50 }
 0x60f   : > { %2692 = vmatprep.subr.mxu1 %v1992_v51 }
 0x610   : > { %2693 = vmatpush3.msra.mxu1 %v1992_v51 }
 0x611   : > { %2694 = vmatprep.subr.mxu1 %v1991_v52 }
 0x612   : > { %2695 = vmatpush3.msra.mxu1 %v1991_v52 }
 0x613   : > { %2696 = vmatprep.subr.mxu1 %v1990_v53 }
 0x614   : > { %2697 = vmatpush3.msra.mxu1 %v1990_v53 }
 0x6b5   : > { %v2612_v29 = vpop.f32.mrf.mxu1 }
 0x6b6   : > { %v1819_v30 = vadd.f32 %v2612_v29, %v1746_v28 }
 0x6b7   : > { %v1813_v31 = vpop.f32.mrf.mxu1 }
 0x6b8   : > { %v1814_v32 = vadd.f32 %v1813_v31, %v1746_v28  ;;  %v1853_v0 = vmax.f32 %v1819_v30, 0.0 }
 0x6ba   : > { %v1852_v34 = vmax.f32 %v1814_v32, 0.0 }
 0x6bc   : > { %2654 = vmatprep.mubr.f32.mxu0 %v1852_v34 }
 0x6bd   : > { %v2615_v35 = vpop.f32.mrf.mxu1  ;;  %2655 = vmatmul.mubr.f32.vlgmr.msra.gmra.mxu0 %v1853_v0 }
 0x6be   : > { %v1829_v2 = vadd.f32 %v2615_v35, %v1746_v28 }
 0x6bf   : > { %v1823_v36 = vpop.f32.mrf.mxu1 }
 0x6c0   : > { %v1824_v37 = vadd.f32 %v1823_v36, %v1746_v28  ;;  %v1855_v39 = vmax.f32 %v1829_v2, 0.0 }
 0x6c2   : > { %v1854_v38 = vmax.f32 %v1824_v37, 0.0 }
 0x6c4   : > { %2657 = vmatprep.mubr.f32.mxu0 %v1854_v38 }
 0x6c5   : > { %v2618_v22 = vpop.f32.mrf.mxu1  ;;  %2658 = vmatmul.mubr.f32.gmra.mxu0 %v1855_v39 }
 0x6c6   : > { %v1839_v40 = vadd.f32 %v2618_v22, %v1746_v28 }
 0x6c7   : > { %v1833_v23 = vpop.f32.mrf.mxu1 }
 0x6c8   : > { %v1834_v41 = vadd.f32 %v1833_v23, %v1746_v28  ;;  %v1857_v43 = vmax.f32 %v1839_v40, 0.0 }
 0x6ca   : > { %v1856_v42 = vmax.f32 %v1834_v41, 0.0 }
 0x6cc   : > { %2660 = vmatprep.mubr.f32.mxu0 %v1856_v42 }
 0x6cd   : > { %v2621_v44 = vpop.f32.mrf.mxu1  ;;  %2661 = vmatmul.mubr.f32.gmra.mxu0 %v1857_v43 }
 0x6ce   : > { %v1849_v45 = vadd.f32 %v2621_v44, %v1746_v28 }
 0x6cf   : > { %v1843_v46 = vpop.f32.mrf.mxu1 }
 0x6d0   : > { %v1844_v47 = vadd.f32 %v1843_v46, %v1746_v28  ;;  %v1859_v49 = vmax.f32 %v1849_v45, 0.0 }
 0x6d2   : > { %v1858_v48 = vmax.f32 %v1844_v47, 0.0 }
 0x6d4   : > { %2663 = vmatprep.mubr.f32.mxu0 %v1858_v48 }
 0x6d5   : > { %2664 = vmatmul.mubr.f32.gmra.mxu0 %v1859_v49 }
 0x77d   : > { %v2656_v62 = vpop.f32.mrf.mxu0 }
 0x77e   : > { %v1949_v54 = vadd.f32 %v2656_v62, %v1876_v61 }
 0x77f   : > { %v1943_v1 = vpop.f32.mrf.mxu0 }
 0x780   : > { %v1944_v5 = vadd.f32 %v1943_v1, %v1876_v61  ;;  %v1983_v56 = vmax.f32 %v1949_v54, 0.0 }
 0x782   : > { %v1982_v55 = vmax.f32 %v1944_v5, 0.0 }
 0x784   : > { %2698 = vmatprep.mubr.f32.mxu1 %v1982_v55 }
 0x785   : > { %v2659_v57 = vpop.f32.mrf.mxu0  ;;  %2699 = vmatmul.mubr.f32.vlgmr.msra.gmra.mxu1 %v1983_v56 }
 0x786   : > { %v1959_v58 = vadd.f32 %v2659_v57, %v1876_v61 }
 0x787   : > { %v1953_v59 = vpop.f32.mrf.mxu0 }
 0x788   : > { %v1954_v60 = vadd.f32 %v1953_v59, %v1876_v61  ;;  %v1985_v7 = vmax.f32 %v1959_v58, 0.0 }
 0x78a   : > { %v1984_v6 = vmax.f32 %v1954_v60, 0.0 }
 0x78c   : > { %2701 = vmatprep.mubr.f32.mxu1 %v1984_v6 }
 0x78d   : > { %v2662_v8 = vpop.f32.mrf.mxu0  ;;  %2702 = vmatmul.mubr.f32.gmra.mxu1 %v1985_v7 }
 0x78e   : > { %v1969_v9 = vadd.f32 %v2662_v8, %v1876_v61 }
 0x78f   : > { %v1963_v10 = vpop.f32.mrf.mxu0 }
 0x790   : > { %v1964_v11 = vadd.f32 %v1963_v10, %v1876_v61  ;;  %v1987_v12 = vmax.f32 %v1969_v9, 0.0 }
 0x792   : > { %v1986_v63 = vmax.f32 %v1964_v11, 0.0 }
 0x794   : > { %2704 = vmatprep.mubr.f32.mxu1 %v1986_v63 }
 0x795   : > { %v2665_v13 = vpop.f32.mrf.mxu0  ;;  %2705 = vmatmul.mubr.f32.gmra.mxu1 %v1987_v12 }
 0x796   : > { %v1979_v14 = vadd.f32 %v2665_v13, %v1876_v61 }
 0x797   : > { %v1973_v15 = vpop.f32.mrf.mxu0 }
 0x798   : > { %v1974_v16 = vadd.f32 %v1973_v15, %v1876_v61  ;;  %v1989_v18 = vmax.f32 %v1979_v14, 0.0 }
 0x79a   : > { %v1988_v17 = vmax.f32 %v1974_v16, 0.0 }
 0x79c   : > { %2707 = vmatprep.mubr.f32.mxu1 %v1988_v17 }
 0x79d   : > { %2708 = vmatmul.mubr.f32.gmra.mxu1 %v1989_v18 }
 0x845   : > { %v2700_v20 = vpop.f32.mrf.mxu1 }
 0x846   : > { %v2079_v21 = vadd.f32 %v2700_v20, %v2006_v19 }
 0x847   : > { %v2073_v3 = vpop.f32.mrf.mxu1 }
 0x848   : > { %2113 = vst [vmem:[%s217_s18 + $0x8] sm:$0xff] %v2079_v21  ;;  %v2074_v33 = vadd.f32 %v2073_v3, %v2006_v19 }
 0x84a   : > { %2112 = vst [vmem:[%s217_s18] sm:$0xff] %v2074_v33 }
 0x84d   : > { %v2703_v4 = vpop.f32.mrf.mxu1 }
 0x84e   : > { %v2089_v24 = vadd.f32 %v2703_v4, %v2006_v19 }
 0x84f   : > { %v2083_v25 = vpop.f32.mrf.mxu1 }
 0x850   : > { %2115 = vst [vmem:[%s217_s18 + $0x18] sm:$0xff] %v2089_v24  ;;  %v2084_v26 = vadd.f32 %v2083_v25, %v2006_v19 }
 0x852   : > { %2114 = vst [vmem:[%s217_s18 + $0x10] sm:$0xff] %v2084_v26 }
 0x855   : > { %v2706_v27 = vpop.f32.mrf.mxu1 }
 0x856   : > { %v2099_v28 = vadd.f32 %v2706_v27, %v2006_v19 }
 0x857   : > { %v2093_v29 = vpop.f32.mrf.mxu1 }
 0x858   : > { %2117 = vst [vmem:[%s217_s18 + $0x28] sm:$0xff] %v2099_v28  ;;  %v2094_v30 = vadd.f32 %v2093_v29, %v2006_v19 }
 0x85a   : > { %2116 = vst [vmem:[%s217_s18 + $0x20] sm:$0xff] %v2094_v30 }
 0x85d   : > { %v2709_v31 = vpop.f32.mrf.mxu1 }
 0x85e   : > { %v2109_v32 = vadd.f32 %v2709_v31, %v2006_v19 }
 0x85f   : > { %v2103_v34 = vpop.f32.mrf.mxu1 }
 0x860   : > { %2119 = vst [vmem:[%s217_s18 + $0x38] sm:$0xff] %v2109_v32  ;;  %v2104_v0 = vadd.f32 %v2103_v34, %v2006_v19 }
 0x862   : > { %2118 = vst [vmem:[%s217_s18 + $0x30] sm:$0xff] %v2104_v0 }
 0x863   : > { %2877 = shalt.err (!%p2874_p9)
}
 0x864   : > { %s2878_s22 = scalar_lea.hbm %s3238_s29, 1024  ;;  %s2882_s26 = scalar_lea.hbm %s3284_s3, 2048 }
 0x865   : > { %p2879_p13 = scmp.ne.s32.totalorder %s3238_s29, %s2878_s22  ;;  %p2883_p4 = scmp.lt.s32.totalorder %s3238_s29, %s3284_s3 }
 0x866   : > { %p2884_p8 = scmp.lt.s32.totalorder %s2882_s26, %s2878_s22 }
 0x867   : > { %p2880_p5 = pnand %p2879_p13, %p3300_p10 }
 0x868   : > { %p2885_p3 = por %p2884_p8, %p2883_p4 }
 0x869   : > { %p2881_p0 = pneg %p2880_p5 }
 0x86b   : > { %p2886_p11 = pnand %p2885_p3, %p2881_p0 }
 0x86d   : > { %2889 = shalt.err (!%p2886_p11)
}
 0x86e   : > { %s2943_s6 = smov 128   ;;  %s2944_s18 = smov 8  }
 0x86f   : > { %2720 = dma.vmem_to_hbm [thread:$0]  (%p3300_p10), %s3233_s20, 1024, %s3238_s29, %s2121_s8, %s2943_s6, %s2943_s6, %s2944_s18  }
 0x870 PF: > { %s2149_s25 = sand.u32 1, %s2920_s12   ;;  %p3301_p1 = scmp.ne.s32.totalorder %s3290_s19, 0 }
 0x871   : > { %p3302_p2 = scmp.ge.s32.totalorder %s2932_s15, 2  ;;  %s2150_s27 = scalar_lea.sflag [#allocation4], %s2149_s25 }
 0x873   : > { %p2734_p6 = pnand %p3302_p2, %p3301_p1 }
 0x875   : > { %p2735_p12 = pneg %p2734_p6 }
 0x877   : > { %2915 = dma.done.wait (%p2735_p12), %s2150_s27, 1024  }
 0x878   : > { %2917 = vsyncadd (%p2735_p12), %s2150_s27, 4294966272  ;;  %p17_p7 = scmp.ge.s32.totalorder %s3037_s7, 4   ;;  %s3303_s12 = smov %s2924_s13 }
 0x879   : > { %s3304_s13 = smov %s2928_s14  ;;  %s3305_s14 = smov %s3053_s11 }
 0x87a   : > { %s3306_s15 = smov %s3037_s7  ;;  %19 = sbr.rel (!%p17_p7) target bundleno = 6 (0x6), region = 88 }
 0x87f   :  { %2155 = vsyncpa [#allocation3], 1 }
 0x880   :  { %2157 = vsyncpa [#allocation3 + $0x1], 1 }
 0x881   :  { %2158 = vsyncpa [#allocation6], 1 }
 0x882   :  { %2159 = vsyncpa [#allocation4], 1 }
 0x883   :  { %2161 = vsyncpa [#allocation4 + $0x1], 1 }

</bundles_post_ra>
